<compile_context>
chip_gen: v5e
topology: v5e:2x2
jax: 0.10.0
libtpu: 0.0.40
codegen_flags: <defaults>
</compile_context>

<pallas_src>
import numpy as np
import jax
import jax.numpy as jnp
from jax.experimental import pallas as pl
from jax.experimental.pallas import tpu as pltpu

# ----------------------- model hyper-parameters (small) -----------------------
COUNT   = 3          # committee size
B       = 2          # batch
IN_SIZE = 32         # in_size
C0      = 4          # hidden_channel
S0      = 8          # hidden_size (spatial after linear reshape)
K1, C1  = 3, 8       # kernel_1, hidden_channel_2
K2, C2  = 3, 8       # kernel_2, hidden_channel_3
K3      = 3          # kernel_3 (out channels = 1)
assert K1 == K2 == K3
K = K1

D1  = C0 * S0 * S0         # 256  linear output features per model
S1  = S0 + K1 - 1          # 10
S2  = S1 + K2 - 1          # 12
S3  = S2 + K3 - 1          # 14
CP0 = COUNT * C0           # 12   lane-packed channels after the linear
CP1 = COUNT * C1           # 24
CP2 = COUNT * C2           # 24

# per-layer 2-D (rows = h*B+b, cols = w*cpacked + c) widths
WCIN1, WCOUT1 = S0 * CP0, S1 * CP1      # 96, 240
WCIN2, WCOUT2 = S1 * CP1, S2 * CP2      # 240, 288
WCIN3, WCOUT3 = S2 * CP2, S3 * 1        # 288, 14 (committee mean folded)

PAD_ROWS   = (K - 1) * B                 # 4   zero border above every payload
STAGE_ROWS = (S2 + 2 * (K - 1)) * B      # 32  tallest padded layer input
STAGE_COLS = WCIN3                       # 288 widest layer input


# ------------------------------ fused kernel ----------------------------------
def committee_kernel(x_ref, w1_ref, b1_ref,
                     t1_ref, bc1_ref, t2_ref, bc2_ref, t3_ref, bc3_ref,
                     out_ref, xs_ref):
    # Zero the staging buffer once; the (K-1)*B border rows above/below every
    # layer's payload stay zero, so the ConvTranspose row-scatter becomes three
    # clean shifted window reads (no overlapping RMWs, no jnp.pad).
    xs_ref[...] = jnp.zeros_like(xs_ref)

    # ---- all-models linear + ReLU (fused, single matmul) ----
    # W1 columns are host-permuted to (ph, pw, model, c0), so the row-pair
    # scatter below lands the activation directly in the (h, b)-interleaved,
    # channel-packed 2-D layout used by every conv layer.
    y = jnp.dot(x_ref[...], w1_ref[...], preferred_element_type=jnp.float32)
    y = jnp.maximum(y + b1_ref[...], 0.0)                     # (B, S0*S0*CP0)
    for ph in range(S0):
        xs_ref[PAD_ROWS + ph * B:PAD_ROWS + (ph + 1) * B, 0:WCIN1] = (
            y[:, ph * WCIN1:(ph + 1) * WCIN1])

    def tconv(t_ref, b_ref, wcin, hout, wcout):
        # ConvTranspose2d over the committee-packed 2-D activation staged in
        # xs_ref (payload at row offset PAD_ROWS, zero borders around it):
        # for each kernel row ki, one lane-dense (hout*B, wcin) x (wcin, wcout)
        # matmul against a host-built block-Toeplitz weight; the register
        # accumulator is bias + the sum of the K shifted-window products.
        acc = b_ref[...]                                      # (1, wcout) bias
        for ki in range(K):
            start = (K - 1 - ki) * B
            xw = xs_ref[start:start + hout * B, 0:wcin]       # shifted window
            acc = acc + jnp.dot(xw, t_ref[ki],
                                preferred_element_type=jnp.float32)
        return acc                                            # (hout*B, wcout)

    def stage(a, rows, cols):                                 # payload for next layer
        xs_ref[PAD_ROWS:PAD_ROWS + rows, 0:cols] = a

    a1 = jnp.maximum(tconv(t1_ref, bc1_ref, WCIN1, S1, WCOUT1), 0.0)   # (20, 240)
    stage(a1, S1 * B, WCOUT1)
    a2 = jnp.maximum(tconv(t2_ref, bc2_ref, WCIN2, S2, WCOUT2), 0.0)   # (24, 288)
    stage(a2, S2 * B, WCOUT2)
    # layer 3 already carries the 1/COUNT committee mean in its weights/bias
    out_ref[...] = tconv(t3_ref, bc3_ref, WCIN3, S3, WCOUT3)           # (28, 14)


# ------------------------------ forward wrapper --------------------------------
def committee_forward(x, p):
    out2d = pl.pallas_call(
        committee_kernel,
        out_shape=jax.ShapeDtypeStruct((S3 * B, S3), jnp.float32),
        scratch_shapes=[pltpu.VMEM((STAGE_ROWS, STAGE_COLS), jnp.float32)],
    )(x, p["W1p"], p["b1p"],
      p["T1"], p["bc1"], p["T2"], p["bc2"], p["T3"], p["bc3"])
    # rows are (h, b)-interleaved; tiny host de-interleave to (B, S3, S3)
    return jnp.transpose(out2d.reshape(S3, B, S3), (1, 0, 2))


# --------------------- deterministic parameter initialization -------------------
def _pack_params(p):
    """Host-side packing: committee lane-packing + block-Toeplitz conv weights."""
    # Linear: permute columns so the flattened output order is (ph, pw, model, c0).
    W1r = np.asarray(p["W1"]).reshape(COUNT, IN_SIZE, C0, S0, S0)
    W1p = np.transpose(W1r, (1, 3, 4, 0, 2)).reshape(IN_SIZE, S0 * S0 * CP0)
    b1r = np.asarray(p["b1"]).reshape(COUNT, C0, S0, S0)
    b1p = np.transpose(b1r, (2, 3, 0, 1)).reshape(1, S0 * S0 * CP0)

    def block_diag(wt):   # (COUNT, cin, cout, k, k) -> (COUNT*cin, COUNT*cout, k, k)
        wt = np.asarray(wt)
        cnt, cin, cout, kh, kw = wt.shape
        out = np.zeros((cnt * cin, cnt * cout, kh, kw), np.float32)
        for m in range(cnt):
            out[m * cin:(m + 1) * cin, m * cout:(m + 1) * cout] = wt[m]
        return out

    def toeplitz(wp, win):  # (cinp, coutp, k, k) -> (k, win*cinp, wout*coutp)
        cinp, coutp, kh, kw = wp.shape
        wout = win + kw - 1
        T = np.zeros((kh, win * cinp, wout * coutp), np.float32)
        for ki in range(kh):
            for kj in range(kw):
                for j in range(win):
                    T[ki, j * cinp:(j + 1) * cinp,
                      (j + kj) * coutp:(j + kj + 1) * coutp] = wp[:, :, ki, kj]
        return T

    Wp1 = block_diag(p["Wt1"])                                   # (12, 24, 3, 3)
    Wp2 = block_diag(p["Wt2"])                                   # (24, 24, 3, 3)
    # layer 3 is linear in its input -> fold the committee mean into the weights.
    Wt3 = np.asarray(p["Wt3"])                                   # (COUNT, C2, 1, 3, 3)
    Wp3 = (Wt3 / COUNT).reshape(COUNT * C2, 1, K3, K3)           # (24, 1, 3, 3)

    T1 = toeplitz(Wp1, S0)                                       # (3, 96, 240)
    T2 = toeplitz(Wp2, S1)                                       # (3, 240, 288)
    T3 = toeplitz(Wp3, S2)                                       # (3, 288, 14)

    bc1 = np.tile(np.asarray(p["bt1"]).reshape(-1), S1)[None].astype(np.float32)
    bc2 = np.tile(np.asarray(p["bt2"]).reshape(-1), S2)[None].astype(np.float32)
    bc3 = np.full((1, S3), float(np.asarray(p["bt3"]).mean()), np.float32)

    return dict(W1p=jnp.asarray(W1p), b1p=jnp.asarray(b1p),
                T1=jnp.asarray(T1), bc1=jnp.asarray(bc1),
                T2=jnp.asarray(T2), bc2=jnp.asarray(bc2),
                T3=jnp.asarray(T3), bc3=jnp.asarray(bc3))


def init_params(key):
    ks = jax.random.split(key, 8)
    W1  = jax.random.normal(ks[0], (COUNT, IN_SIZE, D1), jnp.float32) * 0.05
    b1  = jax.random.normal(ks[1], (COUNT, D1), jnp.float32) * 0.05
    Wt1 = jax.random.normal(ks[2], (COUNT, C0, C1, K1, K1), jnp.float32) * 0.1
    bt1 = jax.random.normal(ks[3], (COUNT, C1), jnp.float32) * 0.1
    Wt2 = jax.random.normal(ks[4], (COUNT, C1, C2, K2, K2), jnp.float32) * 0.1
    bt2 = jax.random.normal(ks[5], (COUNT, C2), jnp.float32) * 0.1
    Wt3 = jax.random.normal(ks[6], (COUNT, C2, 1, K3, K3), jnp.float32) * 0.1
    bt3 = jax.random.normal(ks[7], (COUNT, 1), jnp.float32) * 0.1
    p = dict(W1=W1, b1=b1, Wt1=Wt1, bt1=bt1, Wt2=Wt2, bt2=bt2, Wt3=Wt3, bt3=bt3)
    p.update(_pack_params(p))
    return p


# ------------------------------ pure-JAX reference ------------------------------
def _conv_transpose_ref(x, w, b):
    # x: (B, Cin, H, W) NCHW, w: torch layout (Cin, Cout, kh, kw), b: (Cout,)
    kh, kw = w.shape[2], w.shape[3]
    rhs = jnp.transpose(jnp.flip(w, (2, 3)), (1, 0, 2, 3))        # (Cout, Cin, kh, kw)
    y = jax.lax.conv_general_dilated(
        x, rhs, window_strides=(1, 1),
        padding=[(kh - 1, kh - 1), (kw - 1, kw - 1)],
        dimension_numbers=('NCHW', 'OIHW', 'NCHW'),
        precision=jax.lax.Precision.HIGHEST)
    return y + b[None, :, None, None]


def committee_ref(x, p):
    outs = []
    for m in range(COUNT):
        h = jnp.dot(x, p["W1"][m], precision=jax.lax.Precision.HIGHEST) + p["b1"][m]
        h = jnp.maximum(h, 0.0).reshape(x.shape[0], C0, S0, S0)
        y = jnp.maximum(_conv_transpose_ref(h, p["Wt1"][m], p["bt1"][m]), 0.0)
        y = jnp.maximum(_conv_transpose_ref(y, p["Wt2"][m], p["bt2"][m]), 0.0)
        y = _conv_transpose_ref(y, p["Wt3"][m], p["bt3"][m])
        outs.append(y[:, 0])                                       # squeeze channel
    return jnp.mean(jnp.stack(outs, axis=-1), axis=-1)


# ------------------------------------ main --------------------------------------
if __name__ == "__main__":
    key = jax.random.PRNGKey(0)
    kx, kp = jax.random.split(key)
    x = jax.random.normal(kx, (B, IN_SIZE), jnp.float32)
    params = init_params(kp)

    fwd = jax.jit(lambda xx: committee_forward(xx, params))
    out = jax.block_until_ready(fwd(x))

    ref = jax.block_until_ready(committee_ref(x, params))
    assert out.shape == (B, S3, S3), out.shape
    np.testing.assert_allclose(np.asarray(out), np.asarray(ref), rtol=2e-3, atol=2e-3)
    print("KERNEL_OK")
</pallas_src>

<mosaic_0001>
module attributes {stable_mosaic.version = 11 : i64} {
  func.func @committee_kernel(%arg0: memref<2x32xf32, #tpu.memory_space<vmem>>, %arg1: memref<32x768xf32, #tpu.memory_space<vmem>>, %arg2: memref<1x768xf32, #tpu.memory_space<vmem>>, %arg3: memref<3x96x240xf32, #tpu.memory_space<vmem>>, %arg4: memref<1x240xf32, #tpu.memory_space<vmem>>, %arg5: memref<3x240x288xf32, #tpu.memory_space<vmem>>, %arg6: memref<1x288xf32, #tpu.memory_space<vmem>>, %arg7: memref<3x288x14xf32, #tpu.memory_space<vmem>>, %arg8: memref<1x14xf32, #tpu.memory_space<vmem>>, %arg9: memref<28x14xf32, #tpu.memory_space<vmem>>, %arg10: memref<32x288xf32, #tpu.memory_space<vmem>>) attributes {dimension_semantics = [], scalar_prefetch = 0 : i64, scratch_operands = 1 : i64, tpu.core_type = #tpu.core_type<tc>} {
    %cst = arith.constant 0.000000e+00 : f32
    %0 = vector.broadcast %cst : f32 to vector<32x288xf32>
    %c0 = arith.constant 0 : index
    %c0_0 = arith.constant 0 : index
    %1 = vector.load %arg10[%c0, %c0_0] : memref<32x288xf32, #tpu.memory_space<vmem>>, vector<32x288xf32>
    tpu.vector_store %arg10[%c0, %c0_0], %0 {strides = array<i32>} : memref<32x288xf32, #tpu.memory_space<vmem>>, vector<32x288xf32>,
    %c0_1 = arith.constant 0 : index
    %c0_2 = arith.constant 0 : index
    %2 = vector.load %arg0[%c0_1, %c0_2] : memref<2x32xf32, #tpu.memory_space<vmem>>, vector<2x32xf32>
    %c0_3 = arith.constant 0 : index
    %c0_4 = arith.constant 0 : index
    %3 = vector.load %arg1[%c0_3, %c0_4] : memref<32x768xf32, #tpu.memory_space<vmem>>, vector<32x768xf32>
    %cst_5 = arith.constant dense<0.000000e+00> : vector<2x768xf32>
    %4 = tpu.matmul %2, %3, %cst_5 {dimension_numbers = #tpu.dot_dimension_numbers<[1], [0], [0], [1], [0, 0, 1, 1], [], []>} : vector<2x32xf32>, vector<32x768xf32>, vector<2x768xf32> -> vector<2x768xf32>
    %c0_6 = arith.constant 0 : index
    %c0_7 = arith.constant 0 : index
    %5 = vector.load %arg2[%c0_6, %c0_7] : memref<1x768xf32, #tpu.memory_space<vmem>>, vector<1x768xf32>
    %6 = vector.broadcast %5 : vector<1x768xf32> to vector<2x768xf32>
    %7 = arith.addf %4, %6 : vector<2x768xf32>
    %cst_8 = arith.constant 0.000000e+00 : f32
    %8 = vector.broadcast %cst_8 : f32 to vector<2x768xf32>
    %9 = arith.maximumf %7, %8 : vector<2x768xf32>
    %10 = vector.extract_strided_slice %9 {offsets = [0, 0], sizes = [2, 96], strides = [1, 1]} : vector<2x768xf32> to vector<2x96xf32>
    %c4 = arith.constant 4 : index
    %c0_9 = arith.constant 0 : index
    %11 = vector.load %arg10[%c4, %c0_9] : memref<32x288xf32, #tpu.memory_space<vmem>>, vector<2x96xf32>
    tpu.vector_store %arg10[%c4, %c0_9], %10 {strides = array<i32>} : memref<32x288xf32, #tpu.memory_space<vmem>>, vector<2x96xf32>,
    %12 = vector.extract_strided_slice %9 {offsets = [0, 96], sizes = [2, 96], strides = [1, 1]} : vector<2x768xf32> to vector<2x96xf32>
    %c6 = arith.constant 6 : index
    %c0_10 = arith.constant 0 : index
    %13 = vector.load %arg10[%c6, %c0_10] : memref<32x288xf32, #tpu.memory_space<vmem>>, vector<2x96xf32>
    tpu.vector_store %arg10[%c6, %c0_10], %12 {strides = array<i32>} : memref<32x288xf32, #tpu.memory_space<vmem>>, vector<2x96xf32>,
    %14 = vector.extract_strided_slice %9 {offsets = [0, 192], sizes = [2, 96], strides = [1, 1]} : vector<2x768xf32> to vector<2x96xf32>
    %c8 = arith.constant 8 : index
    %c0_11 = arith.constant 0 : index
    %15 = vector.load %arg10[%c8, %c0_11] : memref<32x288xf32, #tpu.memory_space<vmem>>, vector<2x96xf32>
    tpu.vector_store %arg10[%c8, %c0_11], %14 {strides = array<i32>} : memref<32x288xf32, #tpu.memory_space<vmem>>, vector<2x96xf32>,
    %16 = vector.extract_strided_slice %9 {offsets = [0, 288], sizes = [2, 96], strides = [1, 1]} : vector<2x768xf32> to vector<2x96xf32>
    %c10 = arith.constant 10 : index
    %c0_12 = arith.constant 0 : index
    %17 = vector.load %arg10[%c10, %c0_12] : memref<32x288xf32, #tpu.memory_space<vmem>>, vector<2x96xf32>
    tpu.vector_store %arg10[%c10, %c0_12], %16 {strides = array<i32>} : memref<32x288xf32, #tpu.memory_space<vmem>>, vector<2x96xf32>,
    %18 = vector.extract_strided_slice %9 {offsets = [0, 384], sizes = [2, 96], strides = [1, 1]} : vector<2x768xf32> to vector<2x96xf32>
    %c12 = arith.constant 12 : index
    %c0_13 = arith.constant 0 : index
    %19 = vector.load %arg10[%c12, %c0_13] : memref<32x288xf32, #tpu.memory_space<vmem>>, vector<2x96xf32>
    tpu.vector_store %arg10[%c12, %c0_13], %18 {strides = array<i32>} : memref<32x288xf32, #tpu.memory_space<vmem>>, vector<2x96xf32>,
    %20 = vector.extract_strided_slice %9 {offsets = [0, 480], sizes = [2, 96], strides = [1, 1]} : vector<2x768xf32> to vector<2x96xf32>
    %c14 = arith.constant 14 : index
    %c0_14 = arith.constant 0 : index
    %21 = vector.load %arg10[%c14, %c0_14] : memref<32x288xf32, #tpu.memory_space<vmem>>, vector<2x96xf32>
    tpu.vector_store %arg10[%c14, %c0_14], %20 {strides = array<i32>} : memref<32x288xf32, #tpu.memory_space<vmem>>, vector<2x96xf32>,
    %22 = vector.extract_strided_slice %9 {offsets = [0, 576], sizes = [2, 96], strides = [1, 1]} : vector<2x768xf32> to vector<2x96xf32>
    %c16 = arith.constant 16 : index
    %c0_15 = arith.constant 0 : index
    %23 = vector.load %arg10[%c16, %c0_15] : memref<32x288xf32, #tpu.memory_space<vmem>>, vector<2x96xf32>
    tpu.vector_store %arg10[%c16, %c0_15], %22 {strides = array<i32>} : memref<32x288xf32, #tpu.memory_space<vmem>>, vector<2x96xf32>,
    %24 = vector.extract_strided_slice %9 {offsets = [0, 672], sizes = [2, 96], strides = [1, 1]} : vector<2x768xf32> to vector<2x96xf32>
    %c18 = arith.constant 18 : index
    %c0_16 = arith.constant 0 : index
    %25 = vector.load %arg10[%c18, %c0_16] : memref<32x288xf32, #tpu.memory_space<vmem>>, vector<2x96xf32>
    tpu.vector_store %arg10[%c18, %c0_16], %24 {strides = array<i32>} : memref<32x288xf32, #tpu.memory_space<vmem>>, vector<2x96xf32>,
    %c0_17 = arith.constant 0 : index
    %c0_18 = arith.constant 0 : index
    %26 = vector.load %arg4[%c0_17, %c0_18] : memref<1x240xf32, #tpu.memory_space<vmem>>, vector<1x240xf32>
    %c4_19 = arith.constant 4 : index
    %c0_20 = arith.constant 0 : index
    %27 = vector.load %arg10[%c4_19, %c0_20] : memref<32x288xf32, #tpu.memory_space<vmem>>, vector<20x96xf32>
    %c0_21 = arith.constant 0 : index
    %c0_22 = arith.constant 0 : index
    %c0_23 = arith.constant 0 : index
    %28 = vector.load %arg3[%c0_21, %c0_22, %c0_23] : memref<3x96x240xf32, #tpu.memory_space<vmem>>, vector<1x96x240xf32>
    %29 = vector.shape_cast %28 : vector<1x96x240xf32> to vector<96x240xf32>
    %cst_24 = arith.constant dense<0.000000e+00> : vector<20x240xf32>
    %30 = tpu.matmul %27, %29, %cst_24 {dimension_numbers = #tpu.dot_dimension_numbers<[1], [0], [0], [1], [0, 0, 1, 1], [], []>} : vector<20x96xf32>, vector<96x240xf32>, vector<20x240xf32> -> vector<20x240xf32>
    %31 = vector.broadcast %26 : vector<1x240xf32> to vector<20x240xf32>
    %32 = arith.addf %31, %30 : vector<20x240xf32>
    %c2 = arith.constant 2 : index
    %c0_25 = arith.constant 0 : index
    %33 = vector.load %arg10[%c2, %c0_25] : memref<32x288xf32, #tpu.memory_space<vmem>>, vector<20x96xf32>
    %c1 = arith.constant 1 : index
    %c0_26 = arith.constant 0 : index
    %c0_27 = arith.constant 0 : index
    %34 = vector.load %arg3[%c1, %c0_26, %c0_27] : memref<3x96x240xf32, #tpu.memory_space<vmem>>, vector<1x96x240xf32>
    %35 = vector.shape_cast %34 : vector<1x96x240xf32> to vector<96x240xf32>
    %cst_28 = arith.constant dense<0.000000e+00> : vector<20x240xf32>
    %36 = tpu.matmul %33, %35, %cst_28 {dimension_numbers = #tpu.dot_dimension_numbers<[1], [0], [0], [1], [0, 0, 1, 1], [], []>} : vector<20x96xf32>, vector<96x240xf32>, vector<20x240xf32> -> vector<20x240xf32>
    %37 = arith.addf %32, %36 : vector<20x240xf32>
    %c0_29 = arith.constant 0 : index
    %c0_30 = arith.constant 0 : index
    %38 = vector.load %arg10[%c0_29, %c0_30] : memref<32x288xf32, #tpu.memory_space<vmem>>, vector<20x96xf32>
    %c2_31 = arith.constant 2 : index
    %c0_32 = arith.constant 0 : index
    %c0_33 = arith.constant 0 : index
    %39 = vector.load %arg3[%c2_31, %c0_32, %c0_33] : memref<3x96x240xf32, #tpu.memory_space<vmem>>, vector<1x96x240xf32>
    %40 = vector.shape_cast %39 : vector<1x96x240xf32> to vector<96x240xf32>
    %cst_34 = arith.constant dense<0.000000e+00> : vector<20x240xf32>
    %41 = tpu.matmul %38, %40, %cst_34 {dimension_numbers = #tpu.dot_dimension_numbers<[1], [0], [0], [1], [0, 0, 1, 1], [], []>} : vector<20x96xf32>, vector<96x240xf32>, vector<20x240xf32> -> vector<20x240xf32>
    %42 = arith.addf %37, %41 : vector<20x240xf32>
    %cst_35 = arith.constant 0.000000e+00 : f32
    %43 = vector.broadcast %cst_35 : f32 to vector<20x240xf32>
    %44 = arith.maximumf %42, %43 : vector<20x240xf32>
    %c4_36 = arith.constant 4 : index
    %c0_37 = arith.constant 0 : index
    %45 = vector.load %arg10[%c4_36, %c0_37] : memref<32x288xf32, #tpu.memory_space<vmem>>, vector<20x240xf32>
    tpu.vector_store %arg10[%c4_36, %c0_37], %44 {strides = array<i32>} : memref<32x288xf32, #tpu.memory_space<vmem>>, vector<20x240xf32>,
    %c0_38 = arith.constant 0 : index
    %c0_39 = arith.constant 0 : index
    %46 = vector.load %arg6[%c0_38, %c0_39] : memref<1x288xf32, #tpu.memory_space<vmem>>, vector<1x288xf32>
    %c4_40 = arith.constant 4 : index
    %c0_41 = arith.constant 0 : index
    %47 = vector.load %arg10[%c4_40, %c0_41] : memref<32x288xf32, #tpu.memory_space<vmem>>, vector<24x240xf32>
    %c0_42 = arith.constant 0 : index
    %c0_43 = arith.constant 0 : index
    %c0_44 = arith.constant 0 : index
    %48 = vector.load %arg5[%c0_42, %c0_43, %c0_44] : memref<3x240x288xf32, #tpu.memory_space<vmem>>, vector<1x240x288xf32>
    %49 = vector.shape_cast %48 : vector<1x240x288xf32> to vector<240x288xf32>
    %cst_45 = arith.constant dense<0.000000e+00> : vector<24x288xf32>
    %50 = tpu.matmul %47, %49, %cst_45 {dimension_numbers = #tpu.dot_dimension_numbers<[1], [0], [0], [1], [0, 0, 1, 1], [], []>} : vector<24x240xf32>, vector<240x288xf32>, vector<24x288xf32> -> vector<24x288xf32>
    %51 = vector.broadcast %46 : vector<1x288xf32> to vector<24x288xf32>
    %52 = arith.addf %51, %50 : vector<24x288xf32>
    %c2_46 = arith.constant 2 : index
    %c0_47 = arith.constant 0 : index
    %53 = vector.load %arg10[%c2_46, %c0_47] : memref<32x288xf32, #tpu.memory_space<vmem>>, vector<24x240xf32>
    %c1_48 = arith.constant 1 : index
    %c0_49 = arith.constant 0 : index
    %c0_50 = arith.constant 0 : index
    %54 = vector.load %arg5[%c1_48, %c0_49, %c0_50] : memref<3x240x288xf32, #tpu.memory_space<vmem>>, vector<1x240x288xf32>
    %55 = vector.shape_cast %54 : vector<1x240x288xf32> to vector<240x288xf32>
    %cst_51 = arith.constant dense<0.000000e+00> : vector<24x288xf32>
    %56 = tpu.matmul %53, %55, %cst_51 {dimension_numbers = #tpu.dot_dimension_numbers<[1], [0], [0], [1], [0, 0, 1, 1], [], []>} : vector<24x240xf32>, vector<240x288xf32>, vector<24x288xf32> -> vector<24x288xf32>
    %57 = arith.addf %52, %56 : vector<24x288xf32>
    %c0_52 = arith.constant 0 : index
    %c0_53 = arith.constant 0 : index
    %58 = vector.load %arg10[%c0_52, %c0_53] : memref<32x288xf32, #tpu.memory_space<vmem>>, vector<24x240xf32>
    %c2_54 = arith.constant 2 : index
    %c0_55 = arith.constant 0 : index
    %c0_56 = arith.constant 0 : index
    %59 = vector.load %arg5[%c2_54, %c0_55, %c0_56] : memref<3x240x288xf32, #tpu.memory_space<vmem>>, vector<1x240x288xf32>
    %60 = vector.shape_cast %59 : vector<1x240x288xf32> to vector<240x288xf32>
    %cst_57 = arith.constant dense<0.000000e+00> : vector<24x288xf32>
    %61 = tpu.matmul %58, %60, %cst_57 {dimension_numbers = #tpu.dot_dimension_numbers<[1], [0], [0], [1], [0, 0, 1, 1], [], []>} : vector<24x240xf32>, vector<240x288xf32>, vector<24x288xf32> -> vector<24x288xf32>
    %62 = arith.addf %57, %61 : vector<24x288xf32>
    %cst_58 = arith.constant 0.000000e+00 : f32
    %63 = vector.broadcast %cst_58 : f32 to vector<24x288xf32>
    %64 = arith.maximumf %62, %63 : vector<24x288xf32>
    %c4_59 = arith.constant 4 : index
    %c0_60 = arith.constant 0 : index
    %65 = vector.load %arg10[%c4_59, %c0_60] : memref<32x288xf32, #tpu.memory_space<vmem>>, vector<24x288xf32>
    tpu.vector_store %arg10[%c4_59, %c0_60], %64 {strides = array<i32>} : memref<32x288xf32, #tpu.memory_space<vmem>>, vector<24x288xf32>,
    %c0_61 = arith.constant 0 : index
    %c0_62 = arith.constant 0 : index
    %66 = vector.load %arg8[%c0_61, %c0_62] : memref<1x14xf32, #tpu.memory_space<vmem>>, vector<1x14xf32>
    %c4_63 = arith.constant 4 : index
    %c0_64 = arith.constant 0 : index
    %67 = vector.load %arg10[%c4_63, %c0_64] : memref<32x288xf32, #tpu.memory_space<vmem>>, vector<28x288xf32>
    %c0_65 = arith.constant 0 : index
    %c0_66 = arith.constant 0 : index
    %c0_67 = arith.constant 0 : index
    %68 = vector.load %arg7[%c0_65, %c0_66, %c0_67] : memref<3x288x14xf32, #tpu.memory_space<vmem>>, vector<1x288x14xf32>
    %69 = vector.shape_cast %68 : vector<1x288x14xf32> to vector<288x14xf32>
    %cst_68 = arith.constant dense<0.000000e+00> : vector<28x14xf32>
    %70 = tpu.matmul %67, %69, %cst_68 {dimension_numbers = #tpu.dot_dimension_numbers<[1], [0], [0], [1], [0, 0, 1, 1], [], []>} : vector<28x288xf32>, vector<288x14xf32>, vector<28x14xf32> -> vector<28x14xf32>
    %71 = vector.broadcast %66 : vector<1x14xf32> to vector<28x14xf32>
    %72 = arith.addf %71, %70 : vector<28x14xf32>
    %c2_69 = arith.constant 2 : index
    %c0_70 = arith.constant 0 : index
    %73 = vector.load %arg10[%c2_69, %c0_70] : memref<32x288xf32, #tpu.memory_space<vmem>>, vector<28x288xf32>
    %c1_71 = arith.constant 1 : index
    %c0_72 = arith.constant 0 : index
    %c0_73 = arith.constant 0 : index
    %74 = vector.load %arg7[%c1_71, %c0_72, %c0_73] : memref<3x288x14xf32, #tpu.memory_space<vmem>>, vector<1x288x14xf32>
    %75 = vector.shape_cast %74 : vector<1x288x14xf32> to vector<288x14xf32>
    %cst_74 = arith.constant dense<0.000000e+00> : vector<28x14xf32>
    %76 = tpu.matmul %73, %75, %cst_74 {dimension_numbers = #tpu.dot_dimension_numbers<[1], [0], [0], [1], [0, 0, 1, 1], [], []>} : vector<28x288xf32>, vector<288x14xf32>, vector<28x14xf32> -> vector<28x14xf32>
    %77 = arith.addf %72, %76 : vector<28x14xf32>
    %c0_75 = arith.constant 0 : index
    %c0_76 = arith.constant 0 : index
    %78 = vector.load %arg10[%c0_75, %c0_76] : memref<32x288xf32, #tpu.memory_space<vmem>>, vector<28x288xf32>
    %c2_77 = arith.constant 2 : index
    %c0_78 = arith.constant 0 : index
    %c0_79 = arith.constant 0 : index
    %79 = vector.load %arg7[%c2_77, %c0_78, %c0_79] : memref<3x288x14xf32, #tpu.memory_space<vmem>>, vector<1x288x14xf32>
    %80 = vector.shape_cast %79 : vector<1x288x14xf32> to vector<288x14xf32>
    %cst_80 = arith.constant dense<0.000000e+00> : vector<28x14xf32>
    %81 = tpu.matmul %78, %80, %cst_80 {dimension_numbers = #tpu.dot_dimension_numbers<[1], [0], [0], [1], [0, 0, 1, 1], [], []>} : vector<28x288xf32>, vector<288x14xf32>, vector<28x14xf32> -> vector<28x14xf32>
    %82 = arith.addf %77, %81 : vector<28x14xf32>
    %c0_81 = arith.constant 0 : index
    %c0_82 = arith.constant 0 : index
    %83 = vector.load %arg9[%c0_81, %c0_82] : memref<28x14xf32, #tpu.memory_space<vmem>>, vector<28x14xf32>
    tpu.vector_store %arg9[%c0_81, %c0_82], %82 {strides = array<i32>} : memref<28x14xf32, #tpu.memory_space<vmem>>, vector<28x14xf32>,
    return
  }
}

</mosaic_0001>

<bundles_post_ra>
// kernel: _lambda_.1
= control target key start
LH: loop header
LB: loop body
LE: loop exit
PB: predicated region body
PF: predicated region fallthrough
CT: control target
= control target key end

     0   :  { %14 = vsyncpa [#allocation4], 0  ;;  %s3008_s0 = inlined_call_operand.hbm [shape: f32[2,32], index: 0, kind: input, shape index: {}]   ;;  %s3009_s1 = inlined_call_operand.hbm [shape: f32[32,768], index: 1, kind: input, shape index: {}]   ;;  %s3010_s2 = inlined_call_operand.hbm [shape: f32[1,768], index: 2, kind: input, shape index: {}]   ;;  %s3011_s3 = inlined_call_operand.hbm [shape: f32[3,96,240], index: 3, kind: input, shape index: {}]   ;;  %s3012_s4 = inlined_call_operand.hbm [shape: f32[1,240], index: 4, kind: input, shape index: {}]   ;;  %s3013_s5 = inlined_call_operand.hbm [shape: f32[3,240,288], index: 5, kind: input, shape index: {}]   ;;  %s3014_s6 = inlined_call_operand.hbm [shape: f32[1,288], index: 6, kind: input, shape index: {}]   ;;  %s3015_s7 = inlined_call_operand.hbm [shape: f32[3,288,14], index: 7, kind: input, shape index: {}]   ;;  %s3016_s8 = inlined_call_operand.vmem [shape: f32[1,14], index: 8, kind: input, shape index: {}]   ;;  %s3017_s9 = inlined_call_operand.vmem [shape: f32[28,14], index: 9, kind: output, shape index: {}]  }
   0x1   :  { %15 = vsyncpa [#allocation6], 0 }
   0x2   :  { %16 = vsyncpa [#allocation9], 0 }
   0x3   :  { %17 = vsyncpa [#allocation12], 0  ;;  %s34_s11 = sshll.u32 %s3009_s1, 4  ;;  %s35_s11 = int_to_ptr.hbm [resolvable:$true] %s34_s11 }
   0x4   :  { %18 = vsyncpa [#allocation15], 0  ;;  %s2473_s12 = smov [#allocation5]   ;;  %s58_s16 = sshll.u32 %s3011_s3, 4  ;;  %s59_s16 = int_to_ptr.hbm [resolvable:$true] %s58_s16 }
   0x5   :  { %s36_s13 = sshll.u32 %s2473_s12, 4  ;;  %s2474_s17 = smov 768   ;;  %s37_s13 = int_to_ptr.vmem [resolvable:$true] %s36_s13 }
   0x6   :  { %s2475_s18 = smov 48   ;;  %s2476_s19 = smov [#allocation8]  }
   0x7   :  { %42 = dma.hbm_to_vmem [thread:$0]  %s35_s11, 3072, %s37_s13, [#allocation6], %s2474_s17, %s2474_s17, %s2475_s18  }
   0x8   :  { %s60_s20 = sshll.u32 %s2476_s19, 4  ;;  %s2477_s21 = smov 256   ;;  %s61_s20 = int_to_ptr.vmem [resolvable:$true] %s60_s20 }
   0x9   :  { %s2478_s22 = smov 16   ;;  %s82_s24 = sshll.u32 %s3013_s5, 4  ;;  %s83_s24 = int_to_ptr.hbm [resolvable:$true] %s82_s24 }
   0xa   :  { %66 = dma.hbm_to_vmem [thread:$0]  %s59_s16, 9216, %s61_s20, [#allocation9], %s2477_s21, %s2477_s21, %s2478_s22  }
   0xb   :  { %s2479_s25 = smov [#allocation11]   ;;  %s24_s28 = sshll.u32 %s3008_s0, 4  ;;  %s25_s28 = int_to_ptr.hbm [resolvable:$true] %s24_s28 }
   0xc   :  { %s84_s26 = sshll.u32 %s2479_s25, 4  ;;  %s2480_s29 = smov 384   ;;  %s85_s26 = int_to_ptr.vmem [resolvable:$true] %s84_s26 }
   0xd   :  { %s2481_s30 = smov 24   ;;  %s2482_s10 = smov [#allocation3]  }
   0xe   :  { %90 = dma.hbm_to_vmem [thread:$0]  %s83_s24, 34560, %s85_s26, [#allocation12], %s2480_s29, %s2480_s29, %s2481_s30  }
   0xf   :  { %s26_s11 = sshll.u32 %s2482_s10, 4  ;;  %s48_s14 = sshll.u32 %s3010_s2, 4  ;;  %s27_s11 = int_to_ptr.vmem [resolvable:$true] %s26_s11  ;;  %s49_s14 = int_to_ptr.hbm [resolvable:$true] %s48_s14 }
  0x10   :  { %29 = dma.hbm_to_vmem [thread:$0]  %s25_s28, 32, %s27_s11, [#allocation4]  }
  0x11   :  { %s72_s16 = sshll.u32 %s3012_s4, 4  ;;  %s2483_s17 = smov [#allocation7]   ;;  %s73_s16 = int_to_ptr.hbm [resolvable:$true] %s72_s16 }
  0x12   :  { %s50_s18 = sshll.u32 %s2483_s17, 4  ;;  %s2484_s0 = smov [#allocation10]   ;;  %s51_s18 = int_to_ptr.vmem [resolvable:$true] %s50_s18 }
  0x13   :  { %53 = dma.hbm_to_vmem [thread:$0]  %s49_s14, 96, %s51_s18, [#allocation6]  }
  0x14   :  { %s74_s19 = sshll.u32 %s2484_s0, 4  ;;  %s96_s22 = sshll.u32 %s3014_s6, 4  ;;  %s75_s19 = int_to_ptr.vmem [resolvable:$true] %s74_s19  ;;  %s97_s22 = int_to_ptr.hbm [resolvable:$true] %s96_s22 }
  0x15   :  { %77 = dma.hbm_to_vmem [thread:$0]  %s73_s16, 32, %s75_s19, [#allocation9]  }
  0x16   :  { %s106_s23 = sshll.u32 %s3015_s7, 4  ;;  %s2485_s24 = smov [#allocation13]   ;;  %s107_s23 = int_to_ptr.hbm [resolvable:$true] %s106_s23 }
  0x17   :  { %s98_s4 = sshll.u32 %s2485_s24, 4  ;;  %s2486_s25 = smov [#allocation14]   ;;  %s99_s4 = int_to_ptr.vmem [resolvable:$true] %s98_s4 }
  0x18   :  { %101 = dma.hbm_to_vmem [thread:$0]  %s97_s22, 48, %s99_s4, [#allocation12]  }
  0x19   :  { %s108_s26 = sshll.u32 %s2486_s25, 4  ;;  %s2487_s27 = smov 128   ;;  %s109_s26 = int_to_ptr.vmem [resolvable:$true] %s108_s26 }
  0x1a   :  { %s2488_s3 = smov 8  }
  0x1b   :  { %114 = dma.hbm_to_vmem [thread:$0]  %s107_s23, 13824, %s109_s26, [#allocation15], %s2487_s27, %s2487_s27, %s2488_s3  }
  0x1c   :  { %2463 = dma.done.wait [#allocation4], 32  }
  0x1d   :  { %2464 = vsyncadd [#allocation4], 4294967264 }
  0x1e   :  { %2465 = dma.done.wait [#allocation6], 3168  }
  0x1f   :  { %2466 = vsyncadd [#allocation6], 4294964128 }
  0x20   :  { %2467 = dma.done.wait [#allocation9], 9248  }
  0x21   :  { %2468 = vsyncadd [#allocation9], 4294958048 }
  0x22   :  { %2469 = dma.done.wait [#allocation12], 34608  }
  0x23   :  { %2470 = vsyncadd [#allocation12], 4294932688 }
  0x24   :  { %2471 = dma.done.wait [#allocation15], 13824  }
  0x25   :  { %2472 = vsyncadd [#allocation15], 4294953472  ;;  %v2489_v0 = vmov 0.0   ;;  %vm151_vm0 = vcmask 261120   ;;  %v181_v1 = vld [vmem:[#allocation5 + $0x90] sm:$0xff]  ;;  %v183_v2 = vld [vmem:[#allocation5 + $0xa0] sm:$0xff] }
  0x26   :  { %149 = vst [vmem:[#allocation2] sm:$0xff] %v2489_v0  ;;  %v175_v3 = vld [vmem:[#allocation5 + $0x60] sm:$0xff]  ;;  %216 = vmatpush.msra.mxu1 %v181_v1  ;;  %256 = vmatpush.msra.mxu2 %v183_v2  ;;  %v177_v4 = vld [vmem:[#allocation5 + $0x70] sm:$0xff]  ;;  %v184_v9 = vld [vmem:[#allocation5 + $0xa8] sm:$0xff]  ;;  %vm333_vm1 = vcmask 783364   ;;  %s2490_s6 = smov 32  }
  0x27   :  { %150 = vst [vmem:[#allocation2 + $0x8] sm:$0xff] %v2489_v0  ;;  %v169_v5 = vld [vmem:[#allocation5 + $0x30] sm:$0xff]  ;;  %v171_v6 = vld [vmem:[#allocation5 + $0x40] sm:$0xff]  ;;  %276 = vmatpush.msra.mxu3 %v184_v9  ;;  %v178_v12 = vld [vmem:[#allocation5 + $0x78] sm:$0xff]  ;;  %s2491_s7 = smov 64   ;;  %s2492_s28 = smov 96  }
  0x28   :  { %152 = vst.msk [vmem:[#allocation2 + $0x10] sm:$0xff] %vm151_vm0, %v2489_v0  ;;  %v185_v7 = vld [vmem:[#allocation5 + $0xb0] sm:$0xff]  ;;  %217 = vmatpush.msra.mxu1 %v175_v3  ;;  %257 = vmatpush.msra.mxu2 %v177_v4  ;;  %v163_v8 = vld [vmem:[#allocation5] sm:$0xff]  ;;  %v162_v13 = vld [vmem:[#allocation3] sm:$0x3]  ;;  %vm344_vm2 = vcmask 785414  }
  0x29   :  { %153 = vst [vmem:[#allocation2 + $0x18] sm:$0xff] %v2489_v0  ;;  %v165_v10 = vld [vmem:[#allocation5 + $0x10] sm:$0xff]  ;;  %296 = vmatpush.msra.mxu0 %v185_v7  ;;  %v179_v11 = vld [vmem:[#allocation5 + $0x80] sm:$0xff]  ;;  %v182_v14 = vld [vmem:[#allocation5 + $0x98] sm:$0xff]  ;;  %277 = vmatpush.msra.mxu3 %v178_v12  ;;  %vm351_vm3 = vcmask 523264   ;;  %vm354_vm4 = vcmask 779264  }
  0x2a   :  { %154 = vst [vmem:[#allocation2 + $0x20] sm:$0xff] %v2489_v0  ;;  %218 = vmatpush.msra.mxu1 %v169_v5  ;;  %258 = vmatpush.msra.mxu2 %v171_v6  ;;  %v173_v15 = vld [vmem:[#allocation5 + $0x50] sm:$0xff]  ;;  %v172_v16 = vld [vmem:[#allocation5 + $0x48] sm:$0xff]  ;;  %v167_v18 = vld [vmem:[#allocation5 + $0x20] sm:$0xff]  ;;  %vm360_vm5 = vcmask 781314   ;;  %vm420_vm6 = vcmask 1043456  }
  0x2b   :  { %155 = vst.msk [vmem:[#allocation2 + $0x28] sm:$0xff] %vm151_vm0, %v2489_v0  ;;  %297 = vmatpush.msra.mxu0 %v179_v11  ;;  %v176_v17 = vld [vmem:[#allocation5 + $0x68] sm:$0xff]  ;;  %v166_v19 = vld [vmem:[#allocation5 + $0x18] sm:$0xff]  ;;  %278 = vmatpush.msra.mxu3 %v172_v16  ;;  %v187_v26 = vld [vmem:[#allocation7] sm:$0x3f]  ;;  %vm426_vm7 = vcmask 785408  }
  0x2c   :  { %156 = vst [vmem:[#allocation2 + $0x30] sm:$0xff] %v2489_v0  ;;  %219 = vmatpush.msra.mxu1 %v163_v8  ;;  %259 = vmatpush.msra.mxu2 %v165_v10  ;;  %v170_v20 = vld [vmem:[#allocation5 + $0x38] sm:$0xff]  ;;  %v164_v21 = vld [vmem:[#allocation5 + $0x8] sm:$0xff]  ;;  %v189_v27 = vperm.slane %v187_v26, 0  ;;  %v193_v30 = vperm.slane %v187_v26, 4  ;;  %v191_v32 = vperm.slane %v187_v26, 2 }
  0x2d   :  { %157 = vst [vmem:[#allocation2 + $0x38] sm:$0xff] %v2489_v0  ;;  %2171 = vmatmul.msk.f32.vlgmr.msra.gmra.mxu1 %vm151_vm0, %v162_v13  ;;  %2173 = vmatmul.msk.f32.vlgmr.msra.gmra.mxu2 %vm151_vm0, %v162_v13  ;;  %v186_v22 = vld [vmem:[#allocation5 + $0xb8] sm:$0xff]  ;;  %v180_v23 = vld [vmem:[#allocation5 + $0x88] sm:$0xff]  ;;  %v190_v37 = vperm.slane %v187_v26, 1  ;;  %v192_v42 = vperm.slane %v187_v26, 3  ;;  %v194_v51 = vperm.slane %v187_v26, 5 }
  0x2e   :  { %158 = vst.msk [vmem:[#allocation2 + $0x40] sm:$0xff] %vm151_vm0, %v2489_v0  ;;  %236 = vmatpush.msrb.mxu1 %v182_v14  ;;  %298 = vmatpush.msra.mxu0 %v173_v15  ;;  %v174_v24 = vld [vmem:[#allocation5 + $0x58] sm:$0xff]  ;;  %v168_v25 = vld [vmem:[#allocation5 + $0x28] sm:$0xff]  ;;  %vm525_vm8 = vcmask 1045504   ;;  %vm717_vm9 = vcmask 916484   ;;  %vm720_vm10 = vcmask 916480  }
  0x2f   :  { %159 = vst [vmem:[#allocation2 + $0x48] sm:$0xff] %v2489_v0  ;;  %279 = vmatpush.msra.mxu3 %v166_v19  ;;  %v415_v59 = vld [vmem:[#allocation8 + $0xb0] sm:$0xff]  ;;  %v416_v60 = vld [vmem:[#allocation8 + $0xb8] sm:$0xff]  ;;  %v413_v63 = vld [vmem:[#allocation8 + $0xa0] sm:$0xff]  ;;  %vm1631_vm11 = vcmask 261124   ;;  %vm1641_vm12 = vcmask 257024  }
  0x30   :  { %160 = vst [vmem:[#allocation2 + $0x50] sm:$0xff] %v2489_v0  ;;  %237 = vmatpush.msrb.mxu1 %v176_v17  ;;  %299 = vmatpush.msra.mxu0 %v167_v18  ;;  %v521_v61 = vld [vmem:[#allocation8 + $0x170] sm:$0xff]  ;;  %v522_v62 = vld [vmem:[#allocation8 + $0x178] sm:$0xff]  ;;  %v519_v1 = vld [vmem:[#allocation8 + $0x160] sm:$0xff]  ;;  %vm2156_vm13 = vcmask 113664   ;;  %vm2160_vm14 = vcmask 109568  }
  0x31   :  { %161 = vst.msk [vmem:[#allocation2 + $0x58] sm:$0xff] %vm151_vm0, %v2489_v0  ;;  %2175 = vmatmul.msk.f32.vlgmr.msra.gmra.mxu0 %vm151_vm0, %v162_v13  ;;  %2174 = vmatmul.msk.f32.vlgmr.msra.gmra.mxu3 %vm151_vm0, %v162_v13  ;;  %v414_v0 = vld [vmem:[#allocation8 + $0xa8] sm:$0xff]  ;;  %v411_v3 = vld [vmem:[#allocation8 + $0x90] sm:$0xff]  ;;  %v412_v4 = vld [vmem:[#allocation8 + $0x98] sm:$0xff] }
  0x32   :  { %238 = vmatpush.msrb.mxu1 %v170_v20  ;;  %437 = vmatpush.msrb.mxu2 %v415_v59  ;;  %v520_v2 = vld [vmem:[#allocation8 + $0x168] sm:$0xff]  ;;  %v517_v5 = vld [vmem:[#allocation8 + $0x150] sm:$0xff]  ;;  %v518_v6 = vld [vmem:[#allocation8 + $0x158] sm:$0xff] }
  0x33   :  { %463 = vmatpush.msrb.mxu3 %v416_v60  ;;  %541 = vmatpush.msrb.mxu0 %v521_v61  ;;  %v409_v7 = vld [vmem:[#allocation8 + $0x80] sm:$0xff]  ;;  %v410_v8 = vld [vmem:[#allocation8 + $0x88] sm:$0xff]  ;;  %v407_v12 = vld [vmem:[#allocation8 + $0x70] sm:$0xff] }
  0x34   :  { %239 = vmatpush.msrb.mxu1 %v164_v21  ;;  %438 = vmatpush.msrb.mxu2 %v413_v63  ;;  %v515_v9 = vld [vmem:[#allocation8 + $0x140] sm:$0xff]  ;;  %v516_v10 = vld [vmem:[#allocation8 + $0x148] sm:$0xff]  ;;  %v513_v14 = vld [vmem:[#allocation8 + $0x130] sm:$0xff] }
  0x35   :  { %2172 = vmatmul.msk.f32.vlgmr.msrb.gmra.mxu1 %vm151_vm0, %v162_v13  ;;  %464 = vmatpush.msrb.mxu3 %v414_v0  ;;  %v514_v15 = vld [vmem:[#allocation8 + $0x138] sm:$0xff]  ;;  %v405_v16 = vld [vmem:[#allocation8 + $0x60] sm:$0xff]  ;;  %v406_v17 = vld [vmem:[#allocation8 + $0x68] sm:$0xff] }
  0x36   :  { %316 = vmatpush.msra.mxu1 %v186_v22  ;;  %542 = vmatpush.msrb.mxu0 %v519_v1  ;;  %v511_v18 = vld [vmem:[#allocation8 + $0x120] sm:$0xff]  ;;  %v512_v19 = vld [vmem:[#allocation8 + $0x128] sm:$0xff]  ;;  %v403_v20 = vld [vmem:[#allocation8 + $0x50] sm:$0xff] }
  0x37   :  { %439 = vmatpush.msrb.mxu2 %v411_v3  ;;  %465 = vmatpush.msrb.mxu3 %v412_v4  ;;  %v404_v21 = vld [vmem:[#allocation8 + $0x58] sm:$0xff]  ;;  %v509_v22 = vld [vmem:[#allocation8 + $0x110] sm:$0xff]  ;;  %v507_v26 = vld [vmem:[#allocation8 + $0x100] sm:$0xff] }
  0x38   :  { %317 = vmatpush.msra.mxu1 %v180_v23  ;;  %543 = vmatpush.msrb.mxu0 %v517_v5  ;;  %v510_v23 = vld [vmem:[#allocation8 + $0x118] sm:$0xff]  ;;  %v611_v59 = vld [vmem:[#allocation8 + $0x1e8] sm:$0xff]  ;;  %v608_v60 = vld [vmem:[#allocation8 + $0x1d0] sm:$0xff] }
  0x39   :  { %440 = vmatpush.msrb.mxu2 %v409_v7  ;;  %466 = vmatpush.msrb.mxu3 %v410_v8  ;;  %v609_v61 = vld [vmem:[#allocation8 + $0x1d8] sm:$0xff]  ;;  %v606_v0 = vld [vmem:[#allocation8 + $0x1c0] sm:$0xff]  ;;  %v607_v1 = vld [vmem:[#allocation8 + $0x1c8] sm:$0xff] }
  0x3a   :  { %318 = vmatpush.msra.mxu1 %v174_v24  ;;  %544 = vmatpush.msrb.mxu0 %v515_v9  ;;  %v401_v24 = vld [vmem:[#allocation8 + $0x40] sm:$0xff]  ;;  %v604_v4 = vld [vmem:[#allocation8 + $0x1b0] sm:$0xff]  ;;  %v605_v5 = vld [vmem:[#allocation8 + $0x1b8] sm:$0xff] }
  0x3b   :  { %441 = vmatpush.msrb.mxu2 %v407_v12  ;;  %v603_v7 = vld [vmem:[#allocation8 + $0x1a8] sm:$0xff]  ;;  %v600_v8 = vld [vmem:[#allocation8 + $0x190] sm:$0xff]  ;;  %v601_v9 = vld [vmem:[#allocation8 + $0x198] sm:$0xff] }
  0x3c   :  { %319 = vmatpush.msra.mxu1 %v168_v25  ;;  %545 = vmatpush.msrb.mxu0 %v513_v14  ;;  %v402_v25 = vld [vmem:[#allocation8 + $0x48] sm:$0xff] }
  0x3d   :  { %2176 = vmatmul.msk.f32.vlgmr.msra.gmra.mxu1 %vm151_vm0, %v162_v13  ;;  %v408_v13 = vld [vmem:[#allocation8 + $0x78] sm:$0xff]  ;;  %442 = vmatpush.msrb.mxu2 %v405_v16  ;;  %v599_v12 = vld [vmem:[#allocation8 + $0x188] sm:$0xff] }
  0x3e   :  { %567 = vmatpush.msrb.mxu1 %v522_v62  ;;  %467 = vmatpush.msrb.mxu3 %v408_v13 }
  0x3f   :  { %546 = vmatpush.msrb.mxu0 %v511_v18  ;;  %443 = vmatpush.msrb.mxu2 %v403_v20 }
  0x40   :  { %568 = vmatpush.msrb.mxu1 %v520_v2  ;;  %468 = vmatpush.msrb.mxu3 %v406_v17 }
  0x41   :  { %547 = vmatpush.msrb.mxu0 %v509_v22  ;;  %444 = vmatpush.msrb.mxu2 %v401_v24 }
  0x42   :  { %569 = vmatpush.msrb.mxu1 %v518_v6  ;;  %469 = vmatpush.msrb.mxu3 %v404_v21  ;;  %v602_v6 = vld [vmem:[#allocation8 + $0x1a0] sm:$0xff] }
  0x43   :  { %548 = vmatpush.msrb.mxu0 %v507_v26 }
  0x44   :  { %570 = vmatpush.msrb.mxu1 %v516_v10  ;;  %470 = vmatpush.msrb.mxu3 %v402_v25 }
  0x46   :  { %571 = vmatpush.msrb.mxu1 %v514_v15 }
  0x48   :  { %572 = vmatpush.msrb.mxu1 %v512_v19 }
  0x4a   :  { %573 = vmatpush.msrb.mxu1 %v510_v23 }
  0xaa   :  { %v221_v28 = vpop.f32.mrf.mxu1 }
  0xab   :  { %v222_v29 = vadd.f32 %v221_v28, %v189_v27  ;;  %v508_v27 = vld [vmem:[#allocation8 + $0x108] sm:$0xff] }
  0xac   :  { %574 = vmatpush.msrb.mxu1 %v508_v27 }
  0xad   :  { %v324_v31 = vmax.f32 %v222_v29, 0.0  ;;  %v399_v29 = vld [vmem:[#allocation8 + $0x30] sm:$0xff] }
  0xae   :  { %v301_v33 = vpop.f32.mrf.mxu0  ;;  %445 = vmatpush.msrb.mxu2 %v399_v29 }
  0xaf   :  { %v331_v34 = vrot.slane %v324_v31, 4  ;;  %v302_v35 = vadd.f32 %v301_v33, %v193_v30  ;;  %v336_v36 = vrot.slane %v324_v31, 2  ;;  %v400_v30 = vld [vmem:[#allocation8 + $0x38] sm:$0xff]  ;;  %v505_v31 = vld [vmem:[#allocation8 + $0xf0] sm:$0xff] }
  0xb0   :  { %v261_v38 = vpop.f32.mrf.mxu2  ;;  %471 = vmatpush.msrb.mxu3 %v400_v30  ;;  %v506_v33 = vld [vmem:[#allocation8 + $0xf8] sm:$0xff]  ;;  %549 = vmatpush.msrb.mxu0 %v505_v31 }
  0xb1   :  { %334 = vst.msk [vmem:[#allocation2] sm:$0x30] %vm333_vm1, %v331_v34  ;;  %v262_v39 = vadd.f32 %v261_v38, %v191_v32  ;;  %v328_v40 = vmax.f32 %v302_v35, 0.0  ;;  %338 = vrot.lane.b32.xlu0 %v336_v36, %s2490_s6  ;;  %575 = vmatpush.msrb.mxu1 %v506_v33  ;;  %v397_v34 = vld [vmem:[#allocation8 + $0x20] sm:$0xff]  ;;  %v398_v35 = vld [vmem:[#allocation8 + $0x28] sm:$0xff]  ;;  %v395_v38 = vld [vmem:[#allocation8 + $0x10] sm:$0xff] }
  0xb2   :  { %v241_v41 = vpop.f32.mrf.mxu1  ;;  %v503_v36 = vld [vmem:[#allocation8 + $0xe0] sm:$0xff]  ;;  %446 = vmatpush.msrb.mxu2 %v397_v34  ;;  %472 = vmatpush.msrb.mxu3 %v398_v35  ;;  %v778_v34 = vld [vmem:[#allocation11 + $0x168] sm:$0xff]  ;;  %v775_v35 = vld [vmem:[#allocation11 + $0x150] sm:$0xff] }
  0xb3   :  { %v242_v43 = vadd.f32 %v241_v41, %v190_v37  ;;  %v326_v44 = vmax.f32 %v262_v39, 0.0  ;;  %v368_v45 = vrot.slane %v328_v40, 2  ;;  %v504_v37 = vld [vmem:[#allocation8 + $0xe8] sm:$0xff]  ;;  %550 = vmatpush.msrb.mxu0 %v503_v36  ;;  %v396_v39 = vld [vmem:[#allocation8 + $0x18] sm:$0xff] }
  0xb4   :  { %v281_v47 = vpop.f32.mrf.mxu3  ;;  %576 = vmatpush.msrb.mxu1 %v504_v37  ;;  %447 = vmatpush.msrb.mxu2 %v395_v38  ;;  %v502_v41 = vld [vmem:[#allocation8 + $0xd8] sm:$0xff]  ;;  %v769_v37 = vld [vmem:[#allocation11 + $0x120] sm:$0xff] }
  0xb5   :  { %v325_v46 = vmax.f32 %v242_v43, 0.0  ;;  %349 = vrot.lane.b32.xlu1 %v326_v44, %s2491_s7  ;;  %371 = vrot.lane.b32.xlu2 %v368_v45, %s2490_s6  ;;  %v282_v48 = vadd.f32 %v281_v47, %v192_v42  ;;  %v356_v56 = vrot.slane %v326_v44, 6  ;;  %v393_v42 = vld [vmem:[#allocation8] sm:$0xff]  ;;  %v394_v43 = vld [vmem:[#allocation8 + $0x8] sm:$0xff]  ;;  %v621_v47 = vld [vmem:[#allocation8 + $0x238] sm:$0xff] }
  0xb6   :  { %473 = vmatpush.msrb.mxu3 %v396_v39  ;;  %577 = vmatpush.msrb.mxu1 %v502_v41  ;;  %v499_v44 = vld [vmem:[#allocation8 + $0xc0] sm:$0xff]  ;;  %v500_v45 = vld [vmem:[#allocation8 + $0xc8] sm:$0xff]  ;;  %v779_v38 = vld [vmem:[#allocation11 + $0x170] sm:$0xff] }
  0xb7   :  { %v337_v49 = vrot.slane %v325_v46, 2  ;;  %v327_v50 = vmax.f32 %v282_v48, 0.0  ;;  %448 = vmatpush.msrb.mxu2 %v393_v42  ;;  %v618_v48 = vld [vmem:[#allocation8 + $0x220] sm:$0xff]  ;;  %v766_v39 = vld [vmem:[#allocation11 + $0x108] sm:$0xff]  ;;  %v763_v41 = vld [vmem:[#allocation11 + $0xf0] sm:$0xff] }
  0xb8   :  { %474 = vmatpush.msrb.mxu3 %v394_v43  ;;  %578 = vmatpush.msrb.mxu1 %v500_v45  ;;  %v772_v36 = vld [vmem:[#allocation11 + $0x138] sm:$0xff]  ;;  %v817_v43 = vld [vmem:[#allocation11 + $0x2a0] sm:$0xff] }
  0xb9   :  { %340 = vrot.lane.b32.xlu0 %v337_v49, %s2490_s6  ;;  %v363_v52 = vrot.slane %v327_v50, 4  ;;  %v367_v53 = vrot.slane %v327_v50, 2  ;;  %v619_v49 = vld [vmem:[#allocation8 + $0x228] sm:$0xff]  ;;  %v616_v50 = vld [vmem:[#allocation8 + $0x210] sm:$0xff]  ;;  %v820_v42 = vld [vmem:[#allocation11 + $0x2b8] sm:$0xff] }
  0xba   :  { %v321_v54 = vpop.f32.mrf.mxu1  ;;  %660 = vmatpush.msra.mxu3 %v621_v47  ;;  %882 = vmatpush.msra.mxu1 %v820_v42  ;;  %v773_v45 = vld [vmem:[#allocation11 + $0x140] sm:$0xff]  ;;  %v770_v47 = vld [vmem:[#allocation11 + $0x128] sm:$0xff] }
  0xbb   :  { %365 = vst.msk [vmem:[#allocation2 + $0x18] sm:$0x30] %vm333_vm1, %v363_v52  ;;  %v322_v55 = vadd.f32 %v321_v54, %v194_v51  ;;  %v617_v51 = vld [vmem:[#allocation8 + $0x218] sm:$0xff]  ;;  %v615_v54 = vld [vmem:[#allocation8 + $0x208] sm:$0xff] }
  0xbc   :  { %661 = vmatpush.msra.mxu3 %v619_v49  ;;  %883 = vmatpush.msra.mxu1 %v817_v43  ;;  %v767_v49 = vld [vmem:[#allocation11 + $0x110] sm:$0xff]  ;;  %v774_v42 = vld [vmem:[#allocation11 + $0x148] sm:$0xff] }
  0xbd   :  { %347 = vrot.lane.b32.xlu1 %v325_v46, %s2491_s7  ;;  %369 = vrot.lane.b32.xlu2 %v367_v53, %s2490_s6  ;;  %v329_v57 = vmax.f32 %v322_v55, 0.0  ;;  %v620_v46 = vld [vmem:[#allocation8 + $0x230] sm:$0xff]  ;;  %v614_v53 = vld [vmem:[#allocation8 + $0x200] sm:$0xff] }
  0xbe   :  { %634 = vmatpush.msra.mxu2 %v620_v46  ;;  %662 = vmatpush.msra.mxu3 %v617_v51  ;;  %v760_v46 = vld [vmem:[#allocation11 + $0xd8] sm:$0xff]  ;;  %v754_v51 = vld [vmem:[#allocation11 + $0xa8] sm:$0xff]  ;;  %v807_v43 = vld [vmem:[#allocation11 + $0x250] sm:$0xff] }
  0xbf   :  { %v384_v58 = vrot.slane %v329_v57, 6 }
  0xc0   :  { %635 = vmatpush.msra.mxu2 %v618_v48  ;;  %663 = vmatpush.msra.mxu3 %v615_v54  ;;  %v757_v48 = vld [vmem:[#allocation11 + $0xc0] sm:$0xff]  ;;  %v811_v54 = vld [vmem:[#allocation11 + $0x270] sm:$0xff] }
  0xc1   :  { %357 = vrot.lane.b32.xlu0 %v356_v56, %s2492_s28  ;;  %v612_v56 = vld [vmem:[#allocation8 + $0x1f0] sm:$0xff] }
  0xc2   :  { %636 = vmatpush.msra.mxu2 %v616_v50  ;;  %v814_v50 = vld [vmem:[#allocation11 + $0x288] sm:$0xff] }
  0xc3   :  { %884 = vmatpush.msra.mxu1 %v814_v50  ;;  %v768_v50 = vld [vmem:[#allocation11 + $0x118] sm:$0xff] }
  0xc4   :  { %637 = vmatpush.msra.mxu2 %v614_v53  ;;  %v764_v53 = vld [vmem:[#allocation11 + $0xf8] sm:$0xff] }
  0xc5   :  { %377 = vrot.lane.b32.xlu1 %v328_v40, %s2491_s7  ;;  %379 = vrot.lane.b32.xlu2 %v329_v57, %s2491_s7  ;;  %v501_v40 = vld [vmem:[#allocation8 + $0xd0] sm:$0xff]  ;;  %v613_v57 = vld [vmem:[#allocation8 + $0x1f8] sm:$0xff] }
  0xc6   :  { %551 = vmatpush.msrb.mxu0 %v501_v40  ;;  %638 = vmatpush.msra.mxu2 %v612_v56  ;;  %v776_v40 = vld [vmem:[#allocation11 + $0x158] sm:$0xff]  ;;  %v815_v56 = vld [vmem:[#allocation11 + $0x290] sm:$0xff] }
  0xc7   :  { %664 = vmatpush.msra.mxu3 %v613_v57  ;;  %885 = vmatpush.msra.mxu1 %v811_v54  ;;  %v808_v57 = vld [vmem:[#allocation11 + $0x258] sm:$0xff]  ;;  %v1067_v54 = vld [vmem:[#allocation11 + $0x3f0] sm:$0xff] }
  0xc8   :  { %552 = vmatpush.msrb.mxu0 %v499_v44  ;;  %v821_v44 = vld [vmem:[#allocation11 + $0x2c0] sm:$0xff] }
  0xc9   :  { %385 = vrot.lane.b32.xlu0 %v384_v58, %s2492_s28  ;;  %v610_v58 = vld [vmem:[#allocation8 + $0x1e0] sm:$0xff]  ;;  %665 = vmatpush.msra.mxu3 %v611_v59 }
  0xca   :  { %639 = vmatpush.msra.mxu2 %v610_v58  ;;  %854 = vmatpush.msra.mxu0 %v778_v34  ;;  %v812_v58 = vld [vmem:[#allocation11 + $0x278] sm:$0xff]  ;;  %v805_v59 = vld [vmem:[#allocation11 + $0x240] sm:$0xff] }
  0xcb   :  { %666 = vmatpush.msra.mxu3 %v609_v61  ;;  %886 = vmatpush.msra.mxu1 %v808_v57  ;;  %v809_v61 = vld [vmem:[#allocation11 + $0x260] sm:$0xff]  ;;  %v798_v57 = vld [vmem:[#allocation11 + $0x208] sm:$0xff] }
  0xcc   :  { %640 = vmatpush.msra.mxu2 %v608_v60  ;;  %855 = vmatpush.msra.mxu0 %v775_v35  ;;  %v761_v60 = vld [vmem:[#allocation11 + $0xe0] sm:$0xff] }
  0xcd   :  { %667 = vmatpush.msra.mxu3 %v607_v1  ;;  %887 = vmatpush.msra.mxu1 %v805_v59  ;;  %v755_v1 = vld [vmem:[#allocation11 + $0xb0] sm:$0xff] }
  0xce   :  { %641 = vmatpush.msra.mxu2 %v606_v0  ;;  %856 = vmatpush.msra.mxu0 %v772_v36  ;;  %v745_v0 = vld [vmem:[#allocation11 + $0x60] sm:$0xff]  ;;  %v1118_v36 = vld [vmem:[#allocation11 + $0x588] sm:$0xff]  ;;  %v1103_v59 = vld [vmem:[#allocation11 + $0x510] sm:$0xff] }
  0xcf   :  { %668 = vmatpush.msra.mxu3 %v605_v5  ;;  %v799_v5 = vld [vmem:[#allocation11 + $0x210] sm:$0xff] }
  0xd0   :  { %642 = vmatpush.msra.mxu2 %v604_v4  ;;  %857 = vmatpush.msra.mxu0 %v769_v37  ;;  %v806_v4 = vld [vmem:[#allocation11 + $0x248] sm:$0xff] }
  0xd1   :  { %669 = vmatpush.msra.mxu3 %v603_v7  ;;  %v796_v7 = vld [vmem:[#allocation11 + $0x1f8] sm:$0xff]  ;;  %v782_v37 = vld [vmem:[#allocation11 + $0x188] sm:$0xff] }
  0xd2   :  { %643 = vmatpush.msra.mxu2 %v602_v6  ;;  %858 = vmatpush.msra.mxu0 %v766_v39  ;;  %v803_v6 = vld [vmem:[#allocation11 + $0x230] sm:$0xff]  ;;  %v810_v39 = vld [vmem:[#allocation11 + $0x268] sm:$0xff] }
  0xd3   :  { %670 = vmatpush.msra.mxu3 %v601_v9  ;;  %v752_v9 = vld [vmem:[#allocation11 + $0x98] sm:$0xff] }
  0xd4   :  { %644 = vmatpush.msra.mxu2 %v600_v8  ;;  %859 = vmatpush.msra.mxu0 %v763_v41  ;;  %v800_v8 = vld [vmem:[#allocation11 + $0x218] sm:$0xff]  ;;  %v1115_v41 = vld [vmem:[#allocation11 + $0x570] sm:$0xff] }
  0xd5   :  { %671 = vmatpush.msra.mxu3 %v599_v12  ;;  %v749_v12 = vld [vmem:[#allocation11 + $0x80] sm:$0xff] }
  0xd6   :  { %860 = vmatpush.msra.mxu0 %v760_v46  ;;  %v771_v46 = vld [vmem:[#allocation11 + $0x130] sm:$0xff] }
  0xd8   :  { %861 = vmatpush.msra.mxu0 %v757_v48  ;;  %v1070_v48 = vld [vmem:[#allocation11 + $0x408] sm:$0xff] }
  0xda   :  { %862 = vmatpush.msra.mxu0 %v754_v51  ;;  %v801_v51 = vld [vmem:[#allocation11 + $0x220] sm:$0xff] }
 0x10f   :  { %v372_v11 = vpop.permute.xlu2 %371 }
 0x117   :  { %v370_v28 = vpop.permute.xlu2 %369 }
 0x118   :  { %v373_v32 = vsel %vm151_vm0, %v370_v28, %v372_v11  ;;  %v598_v11 = vld [vmem:[#allocation8 + $0x180] sm:$0xff] }
 0x119   :  { %375 = vst.msk [vmem:[#allocation2 + $0x18] sm:$0xc0] %vm344_vm2, %v373_v32  ;;  %645 = vmatpush.msra.mxu2 %v598_v11  ;;  %v793_v11 = vld [vmem:[#allocation11 + $0x1e0] sm:$0xff] }
 0x11f   :  { %v380_v13 = vpop.permute.xlu2 %379 }
 0x123   :  { %v339_v52 = vpop.permute.xlu0 %338 }
 0x127   :  { %v350_v55 = vpop.permute.xlu1 %349 }
 0x12b   :  { %v341_v62 = vpop.permute.xlu0 %340 }
 0x12c   :  { %v342_v63 = vsel %vm151_vm0, %v339_v52, %v341_v62  ;;  %v818_v52 = vld [vmem:[#allocation11 + $0x2a8] sm:$0xff]  ;;  %v748_v62 = vld [vmem:[#allocation11 + $0x78] sm:$0xff] }
 0x12d   :  { %345 = vst.msk [vmem:[#allocation2] sm:$0xc0] %vm344_vm2, %v342_v63  ;;  %v758_v63 = vld [vmem:[#allocation11 + $0xc8] sm:$0xff] }
 0x12f   :  { %v348_v2 = vpop.permute.xlu1 %347 }
 0x130   :  { %v352_v3 = vsel %vm351_vm3, %v348_v2, %v350_v55  ;;  %v751_v55 = vld [vmem:[#allocation11 + $0x90] sm:$0xff]  ;;  %v802_v2 = vld [vmem:[#allocation11 + $0x228] sm:$0xff] }
 0x131   :  { %355 = vst.msk [vmem:[#allocation2 + $0x18] sm:$0x3] %vm354_vm4, %v352_v3  ;;  %863 = vmatpush.msra.mxu0 %v751_v55  ;;  %v742_v3 = vld [vmem:[#allocation11 + $0x48] sm:$0xff]  ;;  %888 = vmatpush.msra.mxu1 %v802_v2  ;;  %v792_v2 = vld [vmem:[#allocation11 + $0x1d8] sm:$0xff] }
 0x132   :  { %v1106_v55 = vld [vmem:[#allocation11 + $0x528] sm:$0xff] }
 0x133   :  { %v358_v10 = vpop.permute.xlu0 %357  ;;  %864 = vmatpush.msra.mxu0 %v748_v62  ;;  %889 = vmatpush.msra.mxu1 %v799_v5  ;;  %v389_v62 = vld [vmem:[#allocation10] sm:$0x3] }
 0x134   :  { %361 = vst.msk [vmem:[#allocation2 + $0x18] sm:$0xc] %vm360_vm5, %v358_v10  ;;  %v390_v16 = vld [vmem:[#allocation2] sm:$0xf0]  ;;  %v739_v10 = vld [vmem:[#allocation11 + $0x30] sm:$0xff]  ;;  %v2619_v5 = vperm.slane %v389_v62, 0 }
 0x135   :  { %v496_v17 = vld [vmem:[#allocation2] sm:$0xfc]  ;;  %v421_v20 = vrot.slane %v390_v16, 4  ;;  %865 = vmatpush.msra.mxu0 %v745_v0  ;;  %890 = vmatpush.msra.mxu1 %v796_v7  ;;  %v733_v16 = vld [vmem:[#allocation11] sm:$0xff] }
 0x136   :  { %v526_v22 = vrot.slane %v496_v17, 2  ;;  %v595_v32 = vld [vmem:[#allocation2] sm:$0xff] }
 0x137   :  { %v378_v14 = vpop.permute.xlu1 %377  ;;  %866 = vmatpush.msra.mxu0 %v742_v3  ;;  %891 = vmatpush.msra.mxu1 %v793_v11  ;;  %v743_v17 = vld [vmem:[#allocation11 + $0x50] sm:$0xff]  ;;  %v1100_v0 = vld [vmem:[#allocation11 + $0x4f8] sm:$0xff]  ;;  %v1058_v3 = vld [vmem:[#allocation11 + $0x3a8] sm:$0xff] }
 0x138   :  { %v381_v15 = vsel %vm351_vm3, %v378_v14, %v380_v13  ;;  %v736_v13 = vld [vmem:[#allocation11 + $0x18] sm:$0xff]  ;;  %v797_v14 = vld [vmem:[#allocation11 + $0x200] sm:$0xff] }
 0x139   :  { %383 = vst.msk [vmem:[#allocation2 + $0x30] sm:$0x3] %vm354_vm4, %v381_v15  ;;  %867 = vmatpush.msra.mxu0 %v739_v10  ;;  %v746_v15 = vld [vmem:[#allocation11 + $0x68] sm:$0xff]  ;;  %v756_v7 = vld [vmem:[#allocation11 + $0xb8] sm:$0xff] }
 0x13b   :  { %v386_v18 = vpop.permute.xlu0 %385  ;;  %v391_v19 = vld [vmem:[#allocation2 + $0x18] sm:$0xff]  ;;  %868 = vmatpush.msra.mxu0 %v736_v13  ;;  %v753_v13 = vld [vmem:[#allocation11 + $0xa0] sm:$0xff] }
 0x13c   :  { %388 = vst.msk [vmem:[#allocation2 + $0x30] sm:$0xc] %vm360_vm5, %v386_v18  ;;  %v422_v21 = vrot.slane %v391_v19, 4  ;;  %v527_v23 = vrot.slane %v391_v19, 2  ;;  %v790_v18 = vld [vmem:[#allocation11 + $0x1c8] sm:$0xff] }
 0x13d   :  { %892 = vmatpush.msra.mxu1 %v790_v18  ;;  %869 = vmatpush.msra.mxu0 %v733_v16  ;;  %v786_v16 = vld [vmem:[#allocation11 + $0x1a8] sm:$0xff]  ;;  %v1091_v18 = vld [vmem:[#allocation11 + $0x4b0] sm:$0xff] }
 0x13e   :  { %v423_v24 = vsel %vm420_vm6, %v421_v20, %v422_v21  ;;  %v528_v25 = vsel %vm525_vm8, %v526_v22, %v527_v23  ;;  %v794_v20 = vld [vmem:[#allocation11 + $0x1e8] sm:$0xff]  ;;  %v787_v22 = vld [vmem:[#allocation11 + $0x1b0] sm:$0xff] }
 0x13f   :  { %2177 = vmatmul.msk.f32.vlgmr.msrb.gmra.mxu2 %vm426_vm7, %v423_v24  ;;  %2180 = vmatmul.msk.f32.vlgmr.msrb.gmra.mxu3 %vm426_vm7, %v423_v24  ;;  %v791_v24 = vld [vmem:[#allocation11 + $0x1d0] sm:$0xff] }
 0x140   :  { %2183 = vmatmul.msk.f32.vlgmr.msrb.gmra.mxu0 %vm426_vm7, %v528_v25  ;;  %2186 = vmatmul.msk.f32.vlgmr.msrb.gmra.mxu1 %vm426_vm7, %v528_v25  ;;  %v737_v25 = vld [vmem:[#allocation11 + $0x20] sm:$0xff] }
 0x141   :  { %906 = vmatpush.msrb.mxu2 %v779_v38  ;;  %934 = vmatpush.msrb.mxu3 %v821_v44  ;;  %v777_v38 = vld [vmem:[#allocation11 + $0x160] sm:$0xff] }
 0x142   :  { %893 = vmatpush.msra.mxu1 %v787_v22  ;;  %v1073_v44 = vld [vmem:[#allocation11 + $0x420] sm:$0xff]  ;;  %v750_v22 = vld [vmem:[#allocation11 + $0x88] sm:$0xff] }
 0x143   :  { %v392_v26 = vld [vmem:[#allocation2 + $0x30] sm:$0xff]  ;;  %907 = vmatpush.msrb.mxu2 %v776_v40  ;;  %935 = vmatpush.msrb.mxu3 %v818_v52  ;;  %v1076_v40 = vld [vmem:[#allocation11 + $0x438] sm:$0xff] }
 0x144   :  { %v497_v27 = vld [vmem:[#allocation2 + $0x30] sm:$0x3f]  ;;  %v424_v28 = vrot.slane %v392_v26, 4  ;;  %v784_v26 = vld [vmem:[#allocation11 + $0x198] sm:$0xff] }
 0x145   :  { %v529_v29 = vrot.slane %v497_v27, 2  ;;  %v596_v33 = vld [vmem:[#allocation2 + $0x30] sm:$0xf]  ;;  %908 = vmatpush.msrb.mxu2 %v773_v45  ;;  %936 = vmatpush.msrb.mxu3 %v815_v56  ;;  %v816_v27 = vld [vmem:[#allocation11 + $0x298] sm:$0xff] }
 0x146   :  { %v425_v30 = vsel %vm420_vm6, %v422_v21, %v424_v28  ;;  %v740_v21 = vld [vmem:[#allocation11 + $0x38] sm:$0xff]  ;;  %894 = vmatpush.msra.mxu1 %v784_v26  ;;  %v765_v56 = vld [vmem:[#allocation11 + $0x100] sm:$0xff] }
 0x147   :  { %v530_v31 = vsel %vm525_vm8, %v527_v23, %v529_v29  ;;  %2178 = vmatmul.msk.f32.gmra.mxu2 %vm426_vm7, %v425_v30  ;;  %2181 = vmatmul.msk.f32.gmra.mxu3 %vm426_vm7, %v425_v30  ;;  %v819_v23 = vld [vmem:[#allocation11 + $0x2b0] sm:$0xff]  ;;  %v734_v30 = vld [vmem:[#allocation11 + $0x8] sm:$0xff]  ;;  %v1112_v45 = vld [vmem:[#allocation11 + $0x558] sm:$0xff] }
 0x148   :  { %2184 = vmatmul.msk.f32.gmra.mxu0 %vm426_vm7, %v530_v31  ;;  %2187 = vmatmul.msk.f32.gmra.mxu1 %vm426_vm7, %v530_v31  ;;  %v813_v31 = vld [vmem:[#allocation11 + $0x280] sm:$0xff]  ;;  %v1088_v26 = vld [vmem:[#allocation11 + $0x498] sm:$0xff] }
 0x149   :  { %909 = vmatpush.msrb.mxu2 %v770_v47  ;;  %937 = vmatpush.msrb.mxu3 %v812_v58  ;;  %v804_v47 = vld [vmem:[#allocation11 + $0x238] sm:$0xff] }
 0x14a   :  { %v1064_v58 = vld [vmem:[#allocation11 + $0x3d8] sm:$0xff] }
 0x14b   :  { %910 = vmatpush.msrb.mxu2 %v767_v49  ;;  %938 = vmatpush.msrb.mxu3 %v809_v61  ;;  %v1109_v49 = vld [vmem:[#allocation11 + $0x540] sm:$0xff]  ;;  %v795_v61 = vld [vmem:[#allocation11 + $0x1f0] sm:$0xff] }
 0x14d   :  { %911 = vmatpush.msrb.mxu2 %v764_v53  ;;  %939 = vmatpush.msrb.mxu3 %v806_v4  ;;  %v1097_v4 = vld [vmem:[#allocation11 + $0x4e0] sm:$0xff] }
 0x14f   :  { %2179 = vmatmul.msk.f32.gmra.mxu2 %vm426_vm7, %v424_v28  ;;  %2182 = vmatmul.msk.f32.gmra.mxu3 %vm426_vm7, %v424_v28  ;;  %v788_v28 = vld [vmem:[#allocation11 + $0x1b8] sm:$0xff] }
 0x150   :  { %2185 = vmatmul.msk.f32.gmra.mxu0 %vm426_vm7, %v529_v29  ;;  %2188 = vmatmul.msk.f32.gmra.mxu1 %vm426_vm7, %v529_v29  ;;  %v781_v29 = vld [vmem:[#allocation11 + $0x180] sm:$0xff] }
 0x151   :  { %912 = vmatpush.msrb.mxu2 %v761_v60  ;;  %940 = vmatpush.msrb.mxu3 %v803_v6  ;;  %v762_v60 = vld [vmem:[#allocation11 + $0xe8] sm:$0xff]  ;;  %v2621_v6 = vperm.slane %v389_v62, 1 }
 0x152   :  { %895 = vmatpush.msra.mxu1 %v781_v29  ;;  %v1085_v29 = vld [vmem:[#allocation11 + $0x480] sm:$0xff] }
 0x153   :  { %913 = vmatpush.msrb.mxu2 %v758_v63  ;;  %941 = vmatpush.msrb.mxu3 %v800_v8  ;;  %v1061_v63 = vld [vmem:[#allocation11 + $0x3c0] sm:$0xff] }
 0x154   :  { %v789_v8 = vld [vmem:[#allocation11 + $0x1c0] sm:$0xff] }
 0x155   :  { %914 = vmatpush.msrb.mxu2 %v755_v1  ;;  %942 = vmatpush.msrb.mxu3 %v797_v14  ;;  %v759_v1 = vld [vmem:[#allocation11 + $0xd0] sm:$0xff]  ;;  %v1052_v14 = vld [vmem:[#allocation11 + $0x378] sm:$0xff] }
 0x157   :  { %2189 = vmatmul.msk.f32.vlgmr.msra.gmra.mxu2 %vm426_vm7, %v595_v32  ;;  %2192 = vmatmul.msk.f32.vlgmr.msra.gmra.mxu3 %vm426_vm7, %v595_v32  ;;  %v785_v32 = vld [vmem:[#allocation11 + $0x1a0] sm:$0xff] }
 0x158   :  { %915 = vmatpush.msrb.mxu2 %v752_v9  ;;  %943 = vmatpush.msrb.mxu3 %v794_v20  ;;  %v1094_v9 = vld [vmem:[#allocation11 + $0x4c8] sm:$0xff] }
 0x15a   :  { %916 = vmatpush.msrb.mxu2 %v749_v12  ;;  %944 = vmatpush.msrb.mxu3 %v791_v24  ;;  %v1055_v12 = vld [vmem:[#allocation11 + $0x390] sm:$0xff] }
 0x15b   :  { %v747_v24 = vld [vmem:[#allocation11 + $0x70] sm:$0xff] }
 0x15c   :  { %917 = vmatpush.msrb.mxu2 %v746_v15  ;;  %945 = vmatpush.msrb.mxu3 %v788_v28  ;;  %v1043_v28 = vld [vmem:[#allocation11 + $0x330] sm:$0xff] }
 0x15e   :  { %918 = vmatpush.msrb.mxu2 %v743_v17  ;;  %946 = vmatpush.msrb.mxu3 %v785_v32  ;;  %v741_v32 = vld [vmem:[#allocation11 + $0x40] sm:$0xff] }
 0x15f   :  { %2190 = vmatmul.msk.f32.gmra.mxu2 %vm426_vm7, %v391_v19  ;;  %2193 = vmatmul.msk.f32.gmra.mxu3 %vm426_vm7, %v391_v19  ;;  %v822_v19 = vld [vmem:[#allocation11 + $0x2c8] sm:$0xff] }
 0x160   :  { %986 = vmatpush.msrb.mxu0 %v822_v19  ;;  %919 = vmatpush.msrb.mxu2 %v740_v21  ;;  %v783_v19 = vld [vmem:[#allocation11 + $0x190] sm:$0xff] }
 0x161   :  { %947 = vmatpush.msrb.mxu3 %v782_v37 }
 0x162   :  { %987 = vmatpush.msrb.mxu0 %v819_v23  ;;  %920 = vmatpush.msrb.mxu2 %v737_v25  ;;  %v1049_v23 = vld [vmem:[#allocation11 + $0x360] sm:$0xff]  ;;  %v1046_v25 = vld [vmem:[#allocation11 + $0x348] sm:$0xff] }
 0x163   :  { %1148 = vmatpush.msra.mxu3 %v1076_v40 }
 0x164   :  { %988 = vmatpush.msrb.mxu0 %v816_v27  ;;  %921 = vmatpush.msrb.mxu2 %v734_v30  ;;  %v744_v27 = vld [vmem:[#allocation11 + $0x58] sm:$0xff] }
 0x165   :  { %1149 = vmatpush.msra.mxu3 %v1073_v44 }
 0x166   :  { %989 = vmatpush.msrb.mxu0 %v813_v31  ;;  %1176 = vmatpush.msra.mxu2 %v1118_v36  ;;  %v1082_v36 = vld [vmem:[#allocation11 + $0x468] sm:$0xff] }
 0x167   :  { %2191 = vmatmul.msk.f32.gmra.mxu2 %vm426_vm7, %v596_v33  ;;  %2194 = vmatmul.msk.f32.gmra.mxu3 %vm426_vm7, %v596_v33  ;;  %v780_v33 = vld [vmem:[#allocation11 + $0x178] sm:$0xff] }
 0x168   :  { %958 = vmatpush.msrb.mxu1 %v780_v33  ;;  %990 = vmatpush.msrb.mxu0 %v810_v39  ;;  %v1079_v39 = vld [vmem:[#allocation11 + $0x450] sm:$0xff] }
 0x169   :  { %1177 = vmatpush.msra.mxu2 %v1115_v41  ;;  %1150 = vmatpush.msra.mxu3 %v1070_v48 }
 0x16a   :  { %959 = vmatpush.msrb.mxu1 %v777_v38  ;;  %991 = vmatpush.msrb.mxu0 %v807_v43 }
 0x16b   :  { %1178 = vmatpush.msra.mxu2 %v1112_v45  ;;  %1151 = vmatpush.msra.mxu3 %v1067_v54  ;;  %v738_v45 = vld [vmem:[#allocation11 + $0x28] sm:$0xff] }
 0x16c   :  { %960 = vmatpush.msrb.mxu1 %v774_v42  ;;  %992 = vmatpush.msrb.mxu0 %v804_v47  ;;  %v735_v47 = vld [vmem:[#allocation11 + $0x10] sm:$0xff] }
 0x16d   :  { %1179 = vmatpush.msra.mxu2 %v1109_v49  ;;  %1152 = vmatpush.msra.mxu3 %v1064_v58  ;;  %v1034_v49 = vld [vmem:[#allocation11 + $0x2e8] sm:$0xff] }
 0x16e   :  { %961 = vmatpush.msrb.mxu1 %v771_v46  ;;  %993 = vmatpush.msrb.mxu0 %v801_v51  ;;  %v1037_v46 = vld [vmem:[#allocation11 + $0x300] sm:$0xff] }
 0x16f   :  { %1180 = vmatpush.msra.mxu2 %v1106_v55  ;;  %1153 = vmatpush.msra.mxu3 %v1061_v63 }
 0x170   :  { %962 = vmatpush.msrb.mxu1 %v768_v50  ;;  %994 = vmatpush.msrb.mxu0 %v798_v57 }
 0x171   :  { %1181 = vmatpush.msra.mxu2 %v1103_v59  ;;  %1154 = vmatpush.msra.mxu3 %v1058_v3 }
 0x172   :  { %963 = vmatpush.msrb.mxu1 %v765_v56  ;;  %995 = vmatpush.msrb.mxu0 %v795_v61 }
 0x173   :  { %1182 = vmatpush.msra.mxu2 %v1100_v0  ;;  %1155 = vmatpush.msra.mxu3 %v1055_v12 }
 0x174   :  { %964 = vmatpush.msrb.mxu1 %v762_v60  ;;  %996 = vmatpush.msrb.mxu0 %v792_v2 }
 0x175   :  { %1183 = vmatpush.msra.mxu2 %v1097_v4  ;;  %1156 = vmatpush.msra.mxu3 %v1052_v14  ;;  %v1077_v14 = vld [vmem:[#allocation11 + $0x440] sm:$0xff] }
 0x176   :  { %965 = vmatpush.msrb.mxu1 %v759_v1  ;;  %997 = vmatpush.msrb.mxu0 %v789_v8 }
 0x177   :  { %1184 = vmatpush.msra.mxu2 %v1094_v9  ;;  %1157 = vmatpush.msra.mxu3 %v1049_v23 }
 0x178   :  { %966 = vmatpush.msrb.mxu1 %v756_v7  ;;  %998 = vmatpush.msrb.mxu0 %v786_v16 }
 0x179   :  { %1185 = vmatpush.msra.mxu2 %v1091_v18  ;;  %1158 = vmatpush.msra.mxu3 %v1046_v25  ;;  %v1072_v25 = vld [vmem:[#allocation11 + $0x418] sm:$0xff] }
 0x17a   :  { %967 = vmatpush.msrb.mxu1 %v753_v13  ;;  %999 = vmatpush.msrb.mxu0 %v783_v19  ;;  %v1074_v19 = vld [vmem:[#allocation11 + $0x428] sm:$0xff] }
 0x17b   :  { %1186 = vmatpush.msra.mxu2 %v1088_v26  ;;  %1159 = vmatpush.msra.mxu3 %v1043_v28 }
 0x17c   :  { %968 = vmatpush.msrb.mxu1 %v750_v22 }
 0x17d   :  { %1187 = vmatpush.msra.mxu2 %v1085_v29  ;;  %v1068_v29 = vld [vmem:[#allocation11 + $0x3f8] sm:$0xff] }
 0x17e   :  { %969 = vmatpush.msrb.mxu1 %v747_v24  ;;  %v1071_v24 = vld [vmem:[#allocation11 + $0x410] sm:$0xff] }
 0x17f   :  { %1188 = vmatpush.msra.mxu2 %v1082_v36  ;;  %v1119_v36 = vld [vmem:[#allocation11 + $0x590] sm:$0xff] }
 0x180   :  { %970 = vmatpush.msrb.mxu1 %v744_v27 }
 0x181   :  { %1189 = vmatpush.msra.mxu2 %v1079_v39  ;;  %v1066_v39 = vld [vmem:[#allocation11 + $0x3e8] sm:$0xff] }
 0x182   :  { %971 = vmatpush.msrb.mxu1 %v741_v32 }
 0x184   :  { %972 = vmatpush.msrb.mxu1 %v738_v45  ;;  %v1113_v45 = vld [vmem:[#allocation11 + $0x560] sm:$0xff] }
 0x186   :  { %973 = vmatpush.msrb.mxu1 %v735_v47 }
 0x1bd   :  { %v554_v15 = vpop.f32.mrf.mxu0  ;;  %v580_v17 = vpop.f32.mrf.mxu1 }
 0x1c2   :  { %v2611_v34 = vpop.f32.mrf.mxu2  ;;  %v2613_v35 = vpop.f32.mrf.mxu3 }
 0x1c3   :  { %v490_v20 = vadd.f32 %v2619_v5, %v2611_v34  ;;  %v491_v21 = vadd.f32 %v2621_v6, %v2613_v35  ;;  %v1040_v35 = vld [vmem:[#allocation11 + $0x318] sm:$0xff] }
 0x1c4   :  { %1160 = vmatpush.msra.mxu3 %v1040_v35 }
 0x1c5   :  { %v589_v30 = vadd.f32 %v554_v15, %v490_v20  ;;  %v590_v31 = vadd.f32 %v580_v17, %v491_v21  ;;  %v557_v40 = vpop.f32.mrf.mxu0  ;;  %v583_v48 = vpop.f32.mrf.mxu1  ;;  %v1078_v15 = vld [vmem:[#allocation11 + $0x448] sm:$0xff]  ;;  %v1075_v20 = vld [vmem:[#allocation11 + $0x430] sm:$0xff] }
 0x1c6   :  { %1161 = vmatpush.msra.mxu3 %v1037_v46  ;;  %v1114_v46 = vld [vmem:[#allocation11 + $0x568] sm:$0xff] }
 0x1c8   :  { %1162 = vmatpush.msra.mxu3 %v1034_v49  ;;  %v1059_v49 = vld [vmem:[#allocation11 + $0x3b0] sm:$0xff] }
 0x1ca   :  { %v2615_v52 = vpop.f32.mrf.mxu2  ;;  %v2617_v53 = vpop.f32.mrf.mxu3 }
 0x1cb   :  { %v492_v41 = vadd.f32 %v2619_v5, %v2615_v52  ;;  %v493_v42 = vadd.f32 %v2621_v6, %v2617_v53  ;;  %v1031_v52 = vld [vmem:[#allocation11 + $0x2d0] sm:$0xff] }
 0x1cc   :  { %1163 = vmatpush.msra.mxu3 %v1031_v52 }
 0x1cd   :  { %v591_v54 = vadd.f32 %v557_v40, %v492_v41  ;;  %v592_v53 = vadd.f32 %v583_v48, %v493_v42  ;;  %v560_v63 = vpop.f32.mrf.mxu0  ;;  %v586_v2 = vpop.f32.mrf.mxu1  ;;  %v1116_v40 = vld [vmem:[#allocation11 + $0x578] sm:$0xff]  ;;  %v1117_v42 = vld [vmem:[#allocation11 + $0x580] sm:$0xff] }
 0x1ce   :  { %v731_v41 = vld [vmem:[#allocation2 + $0x48] sm:$0xf] }
 0x1cf   :  { %v841_v48 = vrot.slane %v731_v41, 4  ;;  %v1087_v41 = vld [vmem:[#allocation11 + $0x490] sm:$0xff] }
 0x1d2   :  { %v2623_v10 = vpop.f32.mrf.mxu2  ;;  %v2625_v11 = vpop.f32.mrf.mxu3 }
 0x1d3   :  { %v494_v59 = vadd.f32 %v2619_v5, %v2623_v10  ;;  %v495_v60 = vadd.f32 %v2621_v6, %v2625_v11 }
 0x1d5   :  { %v593_v3 = vadd.f32 %v560_v63, %v494_v59  ;;  %v594_v9 = vadd.f32 %v586_v2, %v495_v60  ;;  %v1107_v59 = vld [vmem:[#allocation11 + $0x530] sm:$0xff]  ;;  %v1108_v60 = vld [vmem:[#allocation11 + $0x538] sm:$0xff] }
 0x1da   :  { %v647_v33 = vpop.f32.mrf.mxu2  ;;  %v673_v34 = vpop.f32.mrf.mxu3 }
 0x1db   :  { %v682_v37 = vadd.f32 %v647_v33, %v589_v30  ;;  %v683_v38 = vadd.f32 %v673_v34, %v590_v31  ;;  %v1069_v30 = vld [vmem:[#allocation11 + $0x400] sm:$0xff] }
 0x1dd   :  { %v688_v43 = vmax.f32 %v682_v37, 0.0  ;;  %v689_v44 = vmax.f32 %v683_v38, 0.0  ;;  %v1120_v37 = vld [vmem:[#allocation11 + $0x598] sm:$0xff]  ;;  %v1065_v38 = vld [vmem:[#allocation11 + $0x3e0] sm:$0xff] }
 0x1df   :  { %v700_v50 = vrot.slane %v688_v43, 4  ;;  %v701_v51 = vrot.slane %v689_v44, 4  ;;  %v1062_v43 = vld [vmem:[#allocation11 + $0x3c8] sm:$0xff]  ;;  %v1063_v44 = vld [vmem:[#allocation11 + $0x3d0] sm:$0xff] }
 0x1e1   :  { %716 = vst [vmem:[#allocation2] sm:$0xf0] %v700_v50 }
 0x1e2   :  { %718 = vst.msk [vmem:[#allocation2 + $0x8] sm:$0xf0] %vm717_vm9, %v701_v51  ;;  %v650_v55 = vpop.f32.mrf.mxu2  ;;  %v676_v56 = vpop.f32.mrf.mxu3 }
 0x1e3   :  { %v684_v57 = vadd.f32 %v650_v55, %v591_v54  ;;  %v685_v58 = vadd.f32 %v676_v56, %v592_v53  ;;  %v1110_v54 = vld [vmem:[#allocation11 + $0x548] sm:$0xff]  ;;  %v1111_v53 = vld [vmem:[#allocation11 + $0x550] sm:$0xff] }
 0x1e4   :  { %v732_v56 = vld [vmem:[#allocation2 + $0x50] sm:$0xf] }
 0x1e5   :  { %v690_v61 = vmax.f32 %v684_v57, 0.0  ;;  %v691_v62 = vmax.f32 %v685_v58, 0.0  ;;  %v1056_v57 = vld [vmem:[#allocation11 + $0x398] sm:$0xff]  ;;  %v1057_v58 = vld [vmem:[#allocation11 + $0x3a0] sm:$0xff]  ;;  %v843_v63 = vrot.slane %v732_v56, 4 }
 0x1e6   :  { %v1404_v56 = vld [vmem:[#allocation11 + $0x840] sm:$0xff] }
 0x1e7   :  { %v702_v0 = vrot.slane %v690_v61, 4  ;;  %v704_v1 = vrot.slane %v691_v62, 4  ;;  %v1053_v61 = vld [vmem:[#allocation11 + $0x380] sm:$0xff]  ;;  %v1054_v62 = vld [vmem:[#allocation11 + $0x388] sm:$0xff] }
 0x1e8   :  { %v725_v4 = vld [vmem:[#allocation2] sm:$0xf0] }
 0x1e9   :  { %v2640_v7 = vsel %vm420_vm6, %v700_v50, %v702_v0  ;;  %v705_v8 = vsel %vm420_vm6, %v701_v51, %v704_v1  ;;  %v831_v12 = vrot.slane %v725_v4, 4  ;;  %v726_v23 = vld [vmem:[#allocation2 + $0x8] sm:$0xf0]  ;;  %v1060_v50 = vld [vmem:[#allocation11 + $0x3b8] sm:$0xff]  ;;  %v1051_v4 = vld [vmem:[#allocation11 + $0x370] sm:$0xff] }
 0x1ea   :  { %721 = vst.msk [vmem:[#allocation2 + $0x20] sm:$0xff] %vm720_vm10, %v705_v8  ;;  %v653_v5 = vpop.f32.mrf.mxu2  ;;  %v679_v6 = vpop.f32.mrf.mxu3  ;;  %v832_v10 = vrot.slane %v2640_v7, 4  ;;  %v834_v31 = vrot.slane %v726_v23, 4  ;;  %v1027_v2 = vld [vmem:[#allocation2 + $0x8] sm:$0xfc] }
 0x1eb   :  { %v686_v11 = vadd.f32 %v653_v5, %v593_v3  ;;  %v687_v13 = vadd.f32 %v679_v6, %v594_v9  ;;  %v1050_v3 = vld [vmem:[#allocation11 + $0x368] sm:$0xff]  ;;  %v1101_v9 = vld [vmem:[#allocation11 + $0x500] sm:$0xff]  ;;  %v1128_v5 = vrot.slane %v1027_v2, 2 }
 0x1ec   :  { %v2646_v16 = vsel %vm420_vm6, %v831_v12, %v832_v10  ;;  %v1102_v6 = vld [vmem:[#allocation11 + $0x508] sm:$0xff]  ;;  %v1045_v23 = vld [vmem:[#allocation11 + $0x340] sm:$0xff] }
 0x1ed   :  { %v692_v17 = vmax.f32 %v686_v11, 0.0  ;;  %v693_v18 = vmax.f32 %v687_v13, 0.0  ;;  %870 = vmatmul.f32.vlgmr.msra.gmra.mxu0 %v2646_v16  ;;  %922 = vmatmul.f32.vlgmr.msrb.gmra.mxu2 %v2646_v16  ;;  %v1098_v11 = vld [vmem:[#allocation11 + $0x4e8] sm:$0xff]  ;;  %v1047_v13 = vld [vmem:[#allocation11 + $0x350] sm:$0xff]  ;;  %v1360_v2 = vld [vmem:[#allocation11 + $0x6e0] sm:$0xff] }
 0x1ee   :  { %1200 = vmatpush.msra.mxu0 %v1077_v14  ;;  %1252 = vmatpush.msrb.mxu2 %v1078_v15  ;;  %v1099_v15 = vld [vmem:[#allocation11 + $0x4f0] sm:$0xff] }
 0x1ef   :  { %v706_v21 = vrot.slane %v692_v17, 4  ;;  %v708_v22 = vrot.slane %v693_v18, 4  ;;  %v1048_v17 = vld [vmem:[#allocation11 + $0x358] sm:$0xff]  ;;  %v1095_v18 = vld [vmem:[#allocation11 + $0x4d0] sm:$0xff] }
 0x1f0   :  { %1201 = vmatpush.msra.mxu0 %v1074_v19  ;;  %1253 = vmatpush.msrb.mxu2 %v1075_v20  ;;  %v1044_v19 = vld [vmem:[#allocation11 + $0x338] sm:$0xff] }
 0x1f1   :  { %v2651_v26 = vsel %vm420_vm6, %v702_v0, %v706_v21  ;;  %v709_v27 = vsel %vm420_vm6, %v704_v1, %v708_v22  ;;  %v2654_v28 = vld [vmem:[#allocation2 + $0x20] sm:$0xff]  ;;  %v1105_v1 = vld [vmem:[#allocation11 + $0x520] sm:$0xff]  ;;  %v1126_v21 = vrot.slane %v2640_v7, 2 }
 0x1f2   :  { %723 = vst.msk [vmem:[#allocation2 + $0x38] sm:$0xff] %vm720_vm10, %v709_v27  ;;  %v835_v32 = vrot.slane %v2654_v28, 4  ;;  %v837_v33 = vrot.slane %v2651_v26, 4  ;;  %1202 = vmatpush.msra.mxu0 %v1071_v24  ;;  %1254 = vmatpush.msrb.mxu2 %v1072_v25  ;;  %v1104_v0 = vld [vmem:[#allocation11 + $0x518] sm:$0xff]  ;;  %v1129_v8 = vrot.slane %v2654_v28, 2  ;;  %v1041_v25 = vld [vmem:[#allocation11 + $0x320] sm:$0xff] }
 0x1f3   :  { %v1096_v22 = vld [vmem:[#allocation11 + $0x4d8] sm:$0xff] }
 0x1f4   :  { %v2660_v34 = vsel %vm420_vm6, %v834_v31, %v835_v32  ;;  %v2663_v35 = vsel %vm420_vm6, %v832_v10, %v837_v33  ;;  %1203 = vmatpush.msra.mxu0 %v1068_v29  ;;  %1255 = vmatpush.msrb.mxu2 %v1069_v30  ;;  %v2682_v55 = vsel %vm420_vm6, %v837_v33, %v841_v48  ;;  %v1026_v10 = vld [vmem:[#allocation2] sm:$0xfc]  ;;  %v1089_v29 = vld [vmem:[#allocation11 + $0x4a0] sm:$0xff]  ;;  %v1086_v33 = vld [vmem:[#allocation11 + $0x488] sm:$0xff] }
 0x1f5   :  { %2195 = vmatmul.msk.f32.vlgmr.msra.gmra.mxu1 %vm720_vm10, %v2660_v34  ;;  %2198 = vmatmul.msk.f32.vlgmr.msrb.gmra.mxu3 %vm720_vm10, %v2660_v34  ;;  %v2697_v14 = vsel %vm525_vm8, %v1128_v5, %v1129_v8  ;;  %v1125_v20 = vrot.slane %v1026_v10, 2  ;;  %v1092_v24 = vld [vmem:[#allocation11 + $0x4b8] sm:$0xff]  ;;  %v1093_v31 = vld [vmem:[#allocation11 + $0x4c0] sm:$0xff]  ;;  %v1365_v48 = vld [vmem:[#allocation11 + $0x708] sm:$0xff] }
 0x1f6   :  { %873 = vmatmul.f32.gmra.mxu0 %v2663_v35  ;;  %925 = vmatmul.f32.gmra.mxu2 %v2663_v35  ;;  %v1350_v5 = vld [vmem:[#allocation11 + $0x690] sm:$0xff] }
 0x1f7   :  { %1228 = vmatpush.msra.mxu1 %v1119_v36  ;;  %1280 = vmatpush.msrb.mxu3 %v1120_v37  ;;  %v2704_v30 = vsel %vm525_vm8, %v1125_v20, %v1126_v21  ;;  %v1090_v36 = vld [vmem:[#allocation11 + $0x4a8] sm:$0xff]  ;;  %v1354_v10 = vld [vmem:[#allocation11 + $0x6b0] sm:$0xff]  ;;  %v1348_v20 = vld [vmem:[#allocation11 + $0x680] sm:$0xff] }
 0x1f8   :  { %1204 = vmatpush.msra.mxu0 %v1065_v38  ;;  %1256 = vmatpush.msrb.mxu2 %v1066_v39  ;;  %v1042_v37 = vld [vmem:[#allocation11 + $0x328] sm:$0xff]  ;;  %v1035_v38 = vld [vmem:[#allocation11 + $0x2f0] sm:$0xff] }
 0x1f9   :  { %v2671_v47 = vld [vmem:[#allocation2 + $0x38] sm:$0xff]  ;;  %1229 = vmatpush.msra.mxu1 %v1116_v40  ;;  %1281 = vmatpush.msrb.mxu3 %v1117_v42  ;;  %v1131_v40 = vrot.slane %v2651_v26, 2 }
 0x1fa   :  { %v839_v51 = vrot.slane %v2671_v47, 4  ;;  %1205 = vmatpush.msra.mxu0 %v1062_v43  ;;  %1257 = vmatpush.msrb.mxu2 %v1063_v44  ;;  %v1133_v27 = vrot.slane %v2671_v47, 2  ;;  %v1083_v39 = vld [vmem:[#allocation11 + $0x470] sm:$0xff]  ;;  %v1032_v43 = vld [vmem:[#allocation11 + $0x2d8] sm:$0xff] }
 0x1fb   :  { %1230 = vmatpush.msra.mxu1 %v1113_v45  ;;  %1282 = vmatpush.msrb.mxu3 %v1114_v46  ;;  %v1039_v42 = vld [vmem:[#allocation11 + $0x310] sm:$0xff]  ;;  %v1080_v44 = vld [vmem:[#allocation11 + $0x458] sm:$0xff] }
 0x1fc   :  { %v2675_v52 = vsel %vm420_vm6, %v835_v32, %v839_v51  ;;  %1206 = vmatpush.msra.mxu0 %v1059_v49  ;;  %1258 = vmatpush.msrb.mxu2 %v1060_v50  ;;  %v2688_v12 = vsel %vm420_vm6, %v839_v51, %v843_v63  ;;  %v1038_v32 = vld [vmem:[#allocation11 + $0x308] sm:$0xff]  ;;  %v1084_v46 = vld [vmem:[#allocation11 + $0x478] sm:$0xff]  ;;  %v2717_v49 = vsel %vm525_vm8, %v1126_v21, %v1131_v40  ;;  %v1356_v63 = vld [vmem:[#allocation11 + $0x6c0] sm:$0xff] }
 0x1fd   :  { %2196 = vmatmul.msk.f32.gmra.mxu1 %vm720_vm10, %v2675_v52  ;;  %2199 = vmatmul.msk.f32.gmra.mxu3 %vm720_vm10, %v2675_v52  ;;  %v1407_v50 = vld [vmem:[#allocation11 + $0x858] sm:$0xff]  ;;  %v1396_v21 = vld [vmem:[#allocation11 + $0x800] sm:$0xff] }
 0x1fe   :  { %876 = vmatmul.f32.gmra.mxu0 %v2682_v55  ;;  %928 = vmatmul.f32.gmra.mxu2 %v2682_v55  ;;  %v1028_v51 = vld [vmem:[#allocation2 + $0x48] sm:$0x3] }
 0x1ff   :  { %1231 = vmatpush.msra.mxu1 %v1110_v54  ;;  %1283 = vmatpush.msrb.mxu3 %v1111_v53  ;;  %v1362_v53 = vld [vmem:[#allocation11 + $0x6f0] sm:$0xff] }
 0x200   :  { %1207 = vmatpush.msra.mxu0 %v1056_v57  ;;  %1259 = vmatpush.msrb.mxu2 %v1057_v58  ;;  %v1366_v57 = vld [vmem:[#allocation11 + $0x710] sm:$0xff]  ;;  %v1036_v58 = vld [vmem:[#allocation11 + $0x2f8] sm:$0xff] }
 0x201   :  { %1232 = vmatpush.msra.mxu1 %v1107_v59  ;;  %1284 = vmatpush.msrb.mxu3 %v1108_v60  ;;  %v1359_v59 = vld [vmem:[#allocation11 + $0x6d8] sm:$0xff]  ;;  %v1401_v60 = vld [vmem:[#allocation11 + $0x828] sm:$0xff] }
 0x202   :  { %1208 = vmatpush.msra.mxu0 %v1053_v61  ;;  %1260 = vmatpush.msrb.mxu2 %v1054_v62  ;;  %v1363_v61 = vld [vmem:[#allocation11 + $0x6f8] sm:$0xff]  ;;  %v1033_v62 = vld [vmem:[#allocation11 + $0x2e0] sm:$0xff] }
 0x203   :  { %1233 = vmatpush.msra.mxu1 %v1104_v0  ;;  %1285 = vmatpush.msrb.mxu3 %v1105_v1  ;;  %v1398_v0 = vld [vmem:[#allocation11 + $0x810] sm:$0xff] }
 0x204   :  { %1209 = vmatpush.msra.mxu0 %v1050_v3  ;;  %1261 = vmatpush.msrb.mxu2 %v1051_v4  ;;  %v1408_v3 = vld [vmem:[#allocation11 + $0x860] sm:$0xff]  ;;  %v1353_v4 = vld [vmem:[#allocation11 + $0x6a8] sm:$0xff] }
 0x205   :  { %2197 = vmatmul.msk.f32.gmra.mxu1 %vm720_vm10, %v2688_v12  ;;  %2200 = vmatmul.msk.f32.gmra.mxu3 %vm720_vm10, %v2688_v12 }
 0x206   :  { %1234 = vmatpush.msra.mxu1 %v1101_v9  ;;  %2201 = vmatmul.msk.f32.vlgmr.msrb.gmra.mxu0 %vm720_vm10, %v2660_v34  ;;  %v2711_v34 = vsel %vm525_vm8, %v1129_v8, %v1133_v27  ;;  %v1395_v8 = vld [vmem:[#allocation11 + $0x7f8] sm:$0xff]  ;;  %v1357_v9 = vld [vmem:[#allocation11 + $0x6c8] sm:$0xff] }
 0x207   :  { %2204 = vmatmul.msk.f32.vlgmr.msra.gmra.mxu2 %vm720_vm10, %v2697_v14  ;;  %1286 = vmatpush.msrb.mxu3 %v1102_v6  ;;  %v1392_v6 = vld [vmem:[#allocation11 + $0x7e0] sm:$0xff] }
 0x208   :  { %1235 = vmatpush.msra.mxu1 %v1098_v11  ;;  %1210 = vmatpush.msra.mxu0 %v1047_v13  ;;  %v1402_v11 = vld [vmem:[#allocation11 + $0x830] sm:$0xff]  ;;  %v1389_v13 = vld [vmem:[#allocation11 + $0x7c8] sm:$0xff] }
 0x209   :  { %1287 = vmatpush.msrb.mxu3 %v1099_v15  ;;  %1262 = vmatpush.msrb.mxu2 %v1048_v17  ;;  %v1351_v15 = vld [vmem:[#allocation11 + $0x698] sm:$0xff] }
 0x20a   :  { %1236 = vmatpush.msra.mxu1 %v1095_v18  ;;  %1211 = vmatpush.msra.mxu0 %v1044_v19  ;;  %v1399_v17 = vld [vmem:[#allocation11 + $0x818] sm:$0xff]  ;;  %v1344_v18 = vld [vmem:[#allocation11 + $0x660] sm:$0xff]  ;;  %v1386_v19 = vld [vmem:[#allocation11 + $0x7b0] sm:$0xff] }
 0x20b   :  { %1288 = vmatpush.msrb.mxu3 %v1096_v22  ;;  %1263 = vmatpush.msrb.mxu2 %v1045_v23  ;;  %v1341_v22 = vld [vmem:[#allocation11 + $0x648] sm:$0xff]  ;;  %v1383_v23 = vld [vmem:[#allocation11 + $0x798] sm:$0xff] }
 0x20c   :  { %1237 = vmatpush.msra.mxu1 %v1092_v24  ;;  %1212 = vmatpush.msra.mxu0 %v1041_v25  ;;  %v1345_v24 = vld [vmem:[#allocation11 + $0x668] sm:$0xff] }
 0x20d   :  { %974 = vmatmul.f32.vlgmr.msrb.gmra.mxu1 %v2646_v16  ;;  %1164 = vmatmul.f32.vlgmr.msra.gmra.mxu3 %v2704_v30  ;;  %v1029_v16 = vld [vmem:[#allocation2 + $0x50] sm:$0x3]  ;;  %v1393_v25 = vld [vmem:[#allocation11 + $0x7e8] sm:$0xff] }
 0x20e   :  { %1238 = vmatpush.msra.mxu1 %v1089_v29  ;;  %2202 = vmatmul.msk.f32.gmra.mxu0 %vm720_vm10, %v2675_v52  ;;  %v1137_v45 = vrot.slane %v1029_v16, 2  ;;  %v1081_v52 = vld [vmem:[#allocation11 + $0x460] sm:$0xff]  ;;  %v1342_v29 = vld [vmem:[#allocation11 + $0x650] sm:$0xff] }
 0x20f   :  { %2205 = vmatmul.msk.f32.gmra.mxu2 %vm720_vm10, %v2711_v34  ;;  %1289 = vmatpush.msrb.mxu3 %v1093_v31  ;;  %v1335_v31 = vld [vmem:[#allocation11 + $0x618] sm:$0xff]  ;;  %v1384_v16 = vld [vmem:[#allocation11 + $0x7a0] sm:$0xff] }
 0x210   :  { %1213 = vmatpush.msra.mxu0 %v1038_v32  ;;  %1239 = vmatpush.msra.mxu1 %v1086_v33  ;;  %v2722_v54 = vsel %vm525_vm8, %v1133_v27, %v1137_v45  ;;  %v1380_v27 = vld [vmem:[#allocation11 + $0x780] sm:$0xff]  ;;  %v1377_v32 = vld [vmem:[#allocation11 + $0x768] sm:$0xff]  ;;  %v1339_v33 = vld [vmem:[#allocation11 + $0x638] sm:$0xff] }
 0x211   :  { %1290 = vmatpush.msrb.mxu3 %v1090_v36  ;;  %1264 = vmatpush.msrb.mxu2 %v1042_v37  ;;  %v1387_v36 = vld [vmem:[#allocation11 + $0x7b8] sm:$0xff]  ;;  %v1332_v37 = vld [vmem:[#allocation11 + $0x600] sm:$0xff]  ;;  %v1330_v45 = vld [vmem:[#allocation11 + $0x5f0] sm:$0xff] }
 0x212   :  { %1214 = vmatpush.msra.mxu0 %v1035_v38  ;;  %1240 = vmatpush.msra.mxu1 %v1083_v39  ;;  %v1374_v38 = vld [vmem:[#allocation11 + $0x750] sm:$0xff]  ;;  %v1336_v39 = vld [vmem:[#allocation11 + $0x620] sm:$0xff] }
 0x213   :  { %1291 = vmatpush.msrb.mxu3 %v1087_v41  ;;  %1265 = vmatpush.msrb.mxu2 %v1039_v42  ;;  %v1371_v41 = vld [vmem:[#allocation11 + $0x738] sm:$0xff]  ;;  %v1381_v42 = vld [vmem:[#allocation11 + $0x788] sm:$0xff] }
 0x214   :  { %1215 = vmatpush.msra.mxu0 %v1032_v43  ;;  %1241 = vmatpush.msra.mxu1 %v1080_v44  ;;  %v1326_v43 = vld [vmem:[#allocation11 + $0x5d0] sm:$0xff]  ;;  %v1368_v44 = vld [vmem:[#allocation11 + $0x720] sm:$0xff] }
 0x215   :  { %977 = vmatmul.f32.gmra.mxu1 %v2663_v35  ;;  %1167 = vmatmul.f32.gmra.mxu3 %v2717_v49  ;;  %v1135_v35 = vrot.slane %v1028_v51, 2  ;;  %v1375_v51 = vld [vmem:[#allocation11 + $0x758] sm:$0xff] }
 0x216   :  { %1292 = vmatpush.msrb.mxu3 %v1084_v46  ;;  %1419 = vmatpush.msrb.mxu1 %v1365_v48  ;;  %v1378_v46 = vld [vmem:[#allocation11 + $0x770] sm:$0xff]  ;;  %v1367_v48 = vld [vmem:[#allocation11 + $0x718] sm:$0xff] }
 0x217   :  { %1447 = vmatpush.msrb.mxu0 %v1407_v50  ;;  %2206 = vmatmul.msk.f32.gmra.mxu2 %vm720_vm10, %v2722_v54  ;;  %v2729_v1 = vsel %vm525_vm8, %v1131_v40, %v1135_v35  ;;  %v1329_v40 = vld [vmem:[#allocation11 + $0x5e8] sm:$0xff]  ;;  %v1327_v50 = vld [vmem:[#allocation11 + $0x5d8] sm:$0xff] }
 0x218   :  { %2203 = vmatmul.msk.f32.gmra.mxu0 %vm720_vm10, %v2688_v12  ;;  %1293 = vmatpush.msrb.mxu3 %v1081_v52  ;;  %v1405_v12 = vld [vmem:[#allocation11 + $0x848] sm:$0xff]  ;;  %v1364_v52 = vld [vmem:[#allocation11 + $0x700] sm:$0xff] }
 0x219   :  { %1420 = vmatpush.msrb.mxu1 %v1362_v53  ;;  %1448 = vmatpush.msrb.mxu0 %v1404_v56  ;;  %v1320_v53 = vld [vmem:[#allocation11 + $0x5a0] sm:$0xff]  ;;  %v1409_v35 = vld [vmem:[#allocation11 + $0x868] sm:$0xff] }
 0x21a   :  { %1471 = vmatpush.msra.mxu3 %v1366_v57  ;;  %1266 = vmatpush.msrb.mxu2 %v1036_v58  ;;  %v1324_v56 = vld [vmem:[#allocation11 + $0x5c0] sm:$0xff]  ;;  %v1361_v58 = vld [vmem:[#allocation11 + $0x6e8] sm:$0xff] }
 0x21b   :  { %1421 = vmatpush.msrb.mxu1 %v1359_v59  ;;  %1449 = vmatpush.msrb.mxu0 %v1401_v60  ;;  %v1372_v57 = vld [vmem:[#allocation11 + $0x740] sm:$0xff]  ;;  %v1369_v59 = vld [vmem:[#allocation11 + $0x728] sm:$0xff]  ;;  %v1358_v60 = vld [vmem:[#allocation11 + $0x6d0] sm:$0xff] }
 0x21c   :  { %1472 = vmatpush.msra.mxu3 %v1363_v61  ;;  %1267 = vmatpush.msrb.mxu2 %v1033_v62  ;;  %v1406_v61 = vld [vmem:[#allocation11 + $0x850] sm:$0xff] }
 0x21d   :  { %980 = vmatmul.f32.gmra.mxu1 %v2682_v55  ;;  %1170 = vmatmul.f32.gmra.mxu3 %v2729_v1  ;;  %v1347_v55 = vld [vmem:[#allocation11 + $0x678] sm:$0xff] }
 0x21e   :  { %1422 = vmatpush.msrb.mxu1 %v1356_v63  ;;  %1450 = vmatpush.msrb.mxu0 %v1398_v0  ;;  %v2751_v62 = vld [vmem:[#allocation2] sm:$0xff]  ;;  %v1314_v63 = vld [vmem:[#allocation2 + $0x8] sm:$0xff] }
 0x21f   :  { %1473 = vmatpush.msra.mxu3 %v1360_v2  ;;  %1499 = vmatpush.msra.mxu2 %v1408_v3  ;;  %v1355_v0 = vld [vmem:[#allocation11 + $0x6b8] sm:$0xff]  ;;  %v1352_v2 = vld [vmem:[#allocation11 + $0x6a0] sm:$0xff] }
 0x220   :  { %1423 = vmatpush.msrb.mxu1 %v1353_v4  ;;  %1451 = vmatpush.msrb.mxu0 %v1395_v8  ;;  %v1400_v3 = vld [vmem:[#allocation11 + $0x820] sm:$0xff]  ;;  %v1349_v4 = vld [vmem:[#allocation11 + $0x688] sm:$0xff] }
 0x221   :  { %1474 = vmatpush.msra.mxu3 %v1357_v9  ;;  %1500 = vmatpush.msra.mxu2 %v1405_v12  ;;  %v1397_v8 = vld [vmem:[#allocation11 + $0x808] sm:$0xff]  ;;  %v1346_v9 = vld [vmem:[#allocation11 + $0x670] sm:$0xff] }
 0x222   :  { %1216 = vmatmul.f32.vlgmr.msra.gmra.mxu0 %v2704_v30  ;;  %1268 = vmatmul.f32.vlgmr.msrb.gmra.mxu2 %v2704_v30  ;;  %v1390_v30 = vld [vmem:[#allocation11 + $0x7d0] sm:$0xff] }
 0x223   :  { %1424 = vmatpush.msrb.mxu1 %v1350_v5  ;;  %1452 = vmatpush.msrb.mxu0 %v1392_v6  ;;  %v1394_v12 = vld [vmem:[#allocation11 + $0x7f0] sm:$0xff]  ;;  %v1343_v5 = vld [vmem:[#allocation11 + $0x658] sm:$0xff] }
 0x224   :  { %1475 = vmatpush.msra.mxu3 %v1354_v10  ;;  %1501 = vmatpush.msra.mxu2 %v1402_v11  ;;  %v1391_v6 = vld [vmem:[#allocation11 + $0x7d8] sm:$0xff]  ;;  %v1340_v10 = vld [vmem:[#allocation11 + $0x640] sm:$0xff] }
 0x225   :  { %2207 = vmatmul.msk.f32.vlgmr.msra.gmra.mxu1 %vm720_vm10, %v2697_v14  ;;  %2210 = vmatmul.msk.f32.vlgmr.msrb.gmra.mxu3 %vm720_vm10, %v2697_v14  ;;  %v1338_v14 = vld [vmem:[#allocation11 + $0x630] sm:$0xff]  ;;  %v1388_v11 = vld [vmem:[#allocation11 + $0x7c0] sm:$0xff] }
 0x226   :  { %1425 = vmatpush.msrb.mxu1 %v1347_v55  ;;  %1453 = vmatpush.msrb.mxu0 %v1389_v13  ;;  %v1337_v55 = vld [vmem:[#allocation11 + $0x628] sm:$0xff] }
 0x227   :  { %1476 = vmatpush.msra.mxu3 %v1351_v15  ;;  %1502 = vmatpush.msra.mxu2 %v1399_v17  ;;  %v1385_v13 = vld [vmem:[#allocation11 + $0x7a8] sm:$0xff]  ;;  %v1334_v15 = vld [vmem:[#allocation11 + $0x610] sm:$0xff] }
 0x228   :  { %1426 = vmatpush.msrb.mxu1 %v1344_v18  ;;  %1454 = vmatpush.msrb.mxu0 %v1386_v19  ;;  %v1382_v17 = vld [vmem:[#allocation11 + $0x790] sm:$0xff]  ;;  %v1331_v18 = vld [vmem:[#allocation11 + $0x5f8] sm:$0xff] }
 0x229   :  { %1477 = vmatpush.msra.mxu3 %v1348_v20  ;;  %1503 = vmatpush.msra.mxu2 %v1396_v21  ;;  %v1379_v19 = vld [vmem:[#allocation11 + $0x778] sm:$0xff]  ;;  %v1328_v20 = vld [vmem:[#allocation11 + $0x5e0] sm:$0xff] }
 0x22a   :  { %1427 = vmatpush.msrb.mxu1 %v1341_v22  ;;  %1455 = vmatpush.msrb.mxu0 %v1383_v23  ;;  %v1376_v21 = vld [vmem:[#allocation11 + $0x760] sm:$0xff]  ;;  %v1325_v22 = vld [vmem:[#allocation11 + $0x5c8] sm:$0xff] }
 0x22b   :  { %1478 = vmatpush.msra.mxu3 %v1345_v24  ;;  %1504 = vmatpush.msra.mxu2 %v1393_v25  ;;  %v1373_v23 = vld [vmem:[#allocation11 + $0x748] sm:$0xff]  ;;  %v1322_v24 = vld [vmem:[#allocation11 + $0x5b0] sm:$0xff] }
 0x22c   :  { %1219 = vmatmul.f32.gmra.mxu0 %v2717_v49  ;;  %1271 = vmatmul.f32.gmra.mxu2 %v2717_v49  ;;  %v1323_v49 = vld [vmem:[#allocation11 + $0x5b8] sm:$0xff]  ;;  %v1370_v25 = vld [vmem:[#allocation11 + $0x730] sm:$0xff] }
 0x22d   :  { %2208 = vmatmul.msk.f32.gmra.mxu1 %vm720_vm10, %v2711_v34  ;;  %2211 = vmatmul.msk.f32.gmra.mxu3 %vm720_vm10, %v2711_v34  ;;  %v1333_v34 = vld [vmem:[#allocation11 + $0x608] sm:$0xff] }
 0x22e   :  { %1428 = vmatpush.msrb.mxu1 %v1338_v14  ;;  %1456 = vmatpush.msrb.mxu0 %v1380_v27 }
 0x22f   :  { %1479 = vmatpush.msra.mxu3 %v1342_v29  ;;  %1505 = vmatpush.msra.mxu2 %v1390_v30 }
 0x230   :  { %1429 = vmatpush.msrb.mxu1 %v1335_v31  ;;  %1457 = vmatpush.msrb.mxu0 %v1377_v32 }
 0x231   :  { %1480 = vmatpush.msra.mxu3 %v1339_v33  ;;  %1506 = vmatpush.msra.mxu2 %v1387_v36 }
 0x232   :  { %1430 = vmatpush.msrb.mxu1 %v1332_v37  ;;  %1458 = vmatpush.msrb.mxu0 %v1374_v38 }
 0x233   :  { %1481 = vmatpush.msra.mxu3 %v1336_v39  ;;  %1507 = vmatpush.msra.mxu2 %v1384_v16 }
 0x234   :  { %1431 = vmatpush.msrb.mxu1 %v1329_v40  ;;  %1459 = vmatpush.msrb.mxu0 %v1371_v41 }
 0x235   :  { %1482 = vmatpush.msra.mxu3 %v1333_v34  ;;  %1508 = vmatpush.msra.mxu2 %v1381_v42 }
 0x236   :  { %1222 = vmatmul.f32.gmra.mxu0 %v2729_v1  ;;  %2209 = vmatmul.msk.f32.gmra.mxu1 %vm720_vm10, %v2722_v54 }
 0x237   :  { %1274 = vmatmul.f32.gmra.mxu2 %v2729_v1  ;;  %2212 = vmatmul.msk.f32.gmra.mxu3 %vm720_vm10, %v2722_v54  ;;  %v1321_v54 = vld [vmem:[#allocation11 + $0x5a8] sm:$0xff]  ;;  %v1403_v1 = vld [vmem:[#allocation11 + $0x838] sm:$0xff] }
 0x238   :  { %1432 = vmatpush.msrb.mxu1 %v1326_v43  ;;  %1460 = vmatpush.msrb.mxu0 %v1368_v44 }
 0x239   :  { %1483 = vmatpush.msra.mxu3 %v1330_v45  ;;  %1509 = vmatpush.msra.mxu2 %v1378_v46 }
 0x23a   :  { %1523 = vmatpush.msra.mxu0 %v1367_v48  ;;  %1433 = vmatpush.msrb.mxu1 %v1323_v49 }
 0x23b   :  { %1484 = vmatpush.msra.mxu3 %v1327_v50  ;;  %1510 = vmatpush.msra.mxu2 %v1375_v51 }
 0x23c   :  { %1524 = vmatpush.msra.mxu0 %v1364_v52  ;;  %1434 = vmatpush.msrb.mxu1 %v1320_v53 }
 0x23d   :  { %1485 = vmatpush.msra.mxu3 %v1324_v56  ;;  %1511 = vmatpush.msra.mxu2 %v1372_v57 }
 0x23e   :  { %1525 = vmatpush.msra.mxu0 %v1361_v58  ;;  %1551 = vmatpush.msra.mxu1 %v1409_v35  ;;  %v1671_v58 = vld [vmem:[#allocation14 + $0x78] sm:$0xff] }
 0x23f   :  { %1486 = vmatpush.msra.mxu3 %v1321_v54  ;;  %1512 = vmatpush.msra.mxu2 %v1369_v59  ;;  %v1857_v35 = vld [vmem:[#allocation14 + $0x198] sm:$0xff] }
 0x240   :  { %1526 = vmatpush.msra.mxu0 %v1358_v60  ;;  %1552 = vmatpush.msra.mxu1 %v1406_v61  ;;  %v1670_v60 = vld [vmem:[#allocation14 + $0x70] sm:$0xff] }
 0x241   :  { %1435 = vmatmul.f32.vlgmr.msrb.gmra.mxu1 %v2751_v62  ;;  %2213 = vmatmul.msk.f32.vlgmr.msrb.gmra.mxu0 %vm720_vm10, %v1314_v63  ;;  %v1856_v61 = vld [vmem:[#allocation14 + $0x190] sm:$0xff] }
 0x242   :  { %1487 = vmatmul.f32.vlgmr.msra.gmra.mxu3 %v2751_v62  ;;  %2216 = vmatmul.msk.f32.vlgmr.msra.gmra.mxu2 %vm720_vm10, %v1314_v63 }
 0x243   :  { %1527 = vmatpush.msra.mxu0 %v1355_v0  ;;  %1553 = vmatpush.msra.mxu1 %v1403_v1  ;;  %v1855_v0 = vld [vmem:[#allocation14 + $0x188] sm:$0xff]  ;;  %v1668_v1 = vld [vmem:[#allocation14 + $0x60] sm:$0xff] }
 0x244   :  { %1741 = vmatpush.msrb.mxu2 %v1671_v58  ;;  %v1844_v58 = vld [vmem:[#allocation14 + $0x130] sm:$0xff] }
 0x245   :  { %1528 = vmatpush.msra.mxu0 %v1352_v2  ;;  %1554 = vmatpush.msra.mxu1 %v1400_v3  ;;  %v1687_v2 = vld [vmem:[#allocation14 + $0xf8] sm:$0xff]  ;;  %v1854_v3 = vld [vmem:[#allocation14 + $0x180] sm:$0xff] }
 0x246   :  { %1742 = vmatpush.msrb.mxu2 %v1670_v60  ;;  %1770 = vmatpush.msrb.mxu3 %v1687_v2  ;;  %v1657_v60 = vld [vmem:[#allocation14 + $0x8] sm:$0xff] }
 0x247   :  { %1529 = vmatpush.msra.mxu0 %v1349_v4  ;;  %1555 = vmatpush.msra.mxu1 %v1397_v8  ;;  %v1667_v4 = vld [vmem:[#allocation14 + $0x58] sm:$0xff]  ;;  %v1686_v8 = vld [vmem:[#allocation14 + $0xf0] sm:$0xff] }
 0x248   :  { %1771 = vmatpush.msrb.mxu3 %v1686_v8  ;;  %v1842_v8 = vld [vmem:[#allocation14 + $0x120] sm:$0xff] }
 0x249   :  { %1530 = vmatpush.msra.mxu0 %v1346_v9  ;;  %1556 = vmatpush.msra.mxu1 %v1394_v12  ;;  %v1853_v9 = vld [vmem:[#allocation14 + $0x178] sm:$0xff] }
 0x24a   :  { %1438 = vmatmul.f32.gmra.mxu1 %v2640_v7  ;;  %2214 = vmatmul.msk.f32.gmra.mxu0 %vm720_vm10, %v2654_v28 }
 0x24b   :  { %1490 = vmatmul.f32.gmra.mxu3 %v2640_v7  ;;  %2217 = vmatmul.msk.f32.gmra.mxu2 %vm720_vm10, %v2654_v28 }
 0x24c   :  { %1531 = vmatpush.msra.mxu0 %v1343_v5  ;;  %1557 = vmatpush.msra.mxu1 %v1391_v6  ;;  %v1666_v6 = vld [vmem:[#allocation14 + $0x50] sm:$0xff] }
 0x24e   :  { %1532 = vmatpush.msra.mxu0 %v1340_v10  ;;  %1558 = vmatpush.msra.mxu1 %v1388_v11  ;;  %v1685_v10 = vld [vmem:[#allocation14 + $0xe8] sm:$0xff]  ;;  %v1852_v11 = vld [vmem:[#allocation14 + $0x170] sm:$0xff] }
 0x24f   :  { %1772 = vmatpush.msrb.mxu3 %v1685_v10 }
 0x250   :  { %1533 = vmatpush.msra.mxu0 %v1337_v55  ;;  %1559 = vmatpush.msra.mxu1 %v1385_v13 }
 0x252   :  { %1534 = vmatpush.msra.mxu0 %v1334_v15  ;;  %1560 = vmatpush.msra.mxu1 %v1382_v17  ;;  %v1665_v15 = vld [vmem:[#allocation14 + $0x48] sm:$0xff]  ;;  %v1684_v17 = vld [vmem:[#allocation14 + $0xe0] sm:$0xff] }
 0x253   :  { %1441 = vmatmul.f32.gmra.mxu1 %v2651_v26  ;;  %2215 = vmatmul.msk.f32.gmra.mxu0 %vm720_vm10, %v2671_v47 }
 0x254   :  { %1493 = vmatmul.f32.gmra.mxu3 %v2651_v26  ;;  %2218 = vmatmul.msk.f32.gmra.mxu2 %vm720_vm10, %v2671_v47 }
 0x255   :  { %1535 = vmatpush.msra.mxu0 %v1331_v18  ;;  %1561 = vmatpush.msra.mxu1 %v1379_v19  ;;  %v1851_v18 = vld [vmem:[#allocation14 + $0x168] sm:$0xff]  ;;  %v1664_v19 = vld [vmem:[#allocation14 + $0x40] sm:$0xff] }
 0x256   :  { %1773 = vmatpush.msrb.mxu3 %v1684_v17 }
 0x257   :  { %1536 = vmatpush.msra.mxu0 %v1328_v20  ;;  %1562 = vmatpush.msra.mxu1 %v1376_v21  ;;  %v1683_v20 = vld [vmem:[#allocation14 + $0xd8] sm:$0xff]  ;;  %v1850_v21 = vld [vmem:[#allocation14 + $0x160] sm:$0xff] }
 0x258   :  { %1774 = vmatpush.msrb.mxu3 %v1683_v20  ;;  %v1872_v20 = vld [vmem:[#allocation14 + $0x210] sm:$0xff] }
 0x259   :  { %1537 = vmatpush.msra.mxu0 %v1325_v22  ;;  %1563 = vmatpush.msra.mxu1 %v1373_v23  ;;  %v1663_v22 = vld [vmem:[#allocation14 + $0x38] sm:$0xff]  ;;  %v1682_v23 = vld [vmem:[#allocation14 + $0xd0] sm:$0xff] }
 0x25a   :  { %1775 = vmatpush.msrb.mxu3 %v1682_v23  ;;  %v1672_v23 = vld [vmem:[#allocation14 + $0x80] sm:$0xff] }
 0x25b   :  { %1538 = vmatpush.msra.mxu0 %v1322_v24  ;;  %1564 = vmatpush.msra.mxu1 %v1370_v25  ;;  %v1849_v24 = vld [vmem:[#allocation14 + $0x158] sm:$0xff]  ;;  %v1662_v25 = vld [vmem:[#allocation14 + $0x30] sm:$0xff] }
 0x25c   :  { %1539 = vmatmul.f32.vlgmr.msra.gmra.mxu0 %v2751_v62  ;;  %2219 = vmatmul.msk.f32.vlgmr.msra.gmra.mxu1 %vm720_vm10, %v1314_v63  ;;  %v1669_v63 = vld [vmem:[#allocation14 + $0x68] sm:$0xff] }
 0x25d   :  { %1921 = vmatpush.msrb.mxu0 %v1857_v35  ;;  %1743 = vmatpush.msrb.mxu2 %v1669_v63  ;;  %v1843_v63 = vld [vmem:[#allocation14 + $0x128] sm:$0xff] }
 0x25f   :  { %1922 = vmatpush.msrb.mxu0 %v1856_v61  ;;  %1744 = vmatpush.msrb.mxu2 %v1668_v1  ;;  %v1676_v61 = vld [vmem:[#allocation14 + $0xa0] sm:$0xff] }
 0x261   :  { %1923 = vmatpush.msrb.mxu0 %v1855_v0  ;;  %1745 = vmatpush.msrb.mxu2 %v1667_v4  ;;  %v1675_v4 = vld [vmem:[#allocation14 + $0x98] sm:$0xff] }
 0x263   :  { %1924 = vmatpush.msrb.mxu0 %v1854_v3  ;;  %1746 = vmatpush.msrb.mxu2 %v1666_v6  ;;  %v1656_v3 = vld [vmem:[#allocation14] sm:$0xff] }
 0x264   :  { %1542 = vmatmul.f32.gmra.mxu0 %v2640_v7  ;;  %2220 = vmatmul.msk.f32.gmra.mxu1 %vm720_vm10, %v2654_v28 }
 0x265   :  { %1925 = vmatpush.msrb.mxu0 %v1853_v9  ;;  %1747 = vmatpush.msrb.mxu2 %v1665_v15 }
 0x267   :  { %1926 = vmatpush.msrb.mxu0 %v1852_v11  ;;  %1748 = vmatpush.msrb.mxu2 %v1664_v19  ;;  %v1674_v11 = vld [vmem:[#allocation14 + $0x90] sm:$0xff]  ;;  %v1673_v19 = vld [vmem:[#allocation14 + $0x88] sm:$0xff] }
 0x269   :  { %1927 = vmatpush.msrb.mxu0 %v1851_v18  ;;  %1749 = vmatpush.msrb.mxu2 %v1663_v22 }
 0x26a   :  { %v871_v14 = vpop.f32.mrf.mxu0 }
 0x26b   :  { %1928 = vmatpush.msrb.mxu0 %v1850_v21  ;;  %1750 = vmatpush.msrb.mxu2 %v1662_v25  ;;  %v2049_v21 = vld [vmem:[#allocation14 + $0x330] sm:$0xff]  ;;  %v2048_v25 = vld [vmem:[#allocation14 + $0x328] sm:$0xff] }
 0x26c   :  { %1545 = vmatmul.f32.gmra.mxu0 %v2651_v26  ;;  %2221 = vmatmul.msk.f32.gmra.mxu1 %vm720_vm10, %v2671_v47 }
 0x26d   :  { %1929 = vmatpush.msrb.mxu0 %v1849_v24  ;;  %v1871_v24 = vld [vmem:[#allocation14 + $0x208] sm:$0xff] }
 0x270   :  { %v923_v27 = vpop.f32.mrf.mxu2 }
 0x272   :  { %v897_v29 = vpop.f32.mrf.mxu1 }
 0x273   :  { %v2777_v30 = vadd.f32 %v897_v29, %v871_v14  ;;  %v874_v31 = vpop.f32.mrf.mxu0  ;;  %v1681_v14 = vld [vmem:[#allocation14 + $0xc8] sm:$0xff] }
 0x274   :  { %1776 = vmatpush.msrb.mxu3 %v1681_v14 }
 0x278   :  { %v949_v32 = vpop.f32.mrf.mxu3 }
 0x279   :  { %v2779_v33 = vadd.f32 %v949_v32, %v923_v27  ;;  %v926_v36 = vpop.f32.mrf.mxu2  ;;  %v1848_v27 = vld [vmem:[#allocation14 + $0x150] sm:$0xff]  ;;  %v1661_v32 = vld [vmem:[#allocation14 + $0x28] sm:$0xff] }
 0x27a   :  { %v900_v37 = vpop.f32.mrf.mxu1  ;;  %1930 = vmatpush.msrb.mxu0 %v1848_v27  ;;  %1751 = vmatpush.msrb.mxu2 %v1661_v32 }
 0x27b   :  { %v2781_v7 = vadd.f32 %v900_v37, %v874_v31  ;;  %v877_v38 = vpop.f32.mrf.mxu0  ;;  %v1847_v37 = vld [vmem:[#allocation14 + $0x148] sm:$0xff] }
 0x27c   :  { %1931 = vmatpush.msrb.mxu0 %v1847_v37  ;;  %v2047_v37 = vld [vmem:[#allocation14 + $0x320] sm:$0xff] }
 0x280   :  { %v952_v28 = vpop.f32.mrf.mxu3 }
 0x281   :  { %v2783_v39 = vadd.f32 %v952_v28, %v926_v36  ;;  %v929_v26 = vpop.f32.mrf.mxu2  ;;  %v1680_v36 = vld [vmem:[#allocation14 + $0xc0] sm:$0xff] }
 0x282   :  { %v903_v16 = vpop.f32.mrf.mxu1  ;;  %1777 = vmatpush.msrb.mxu3 %v1680_v36  ;;  %v1870_v36 = vld [vmem:[#allocation14 + $0x200] sm:$0xff] }
 0x283   :  { %v2785_v40 = vadd.f32 %v903_v16, %v877_v38  ;;  %v1001_v47 = vpop.f32.mrf.mxu0  ;;  %v1679_v16 = vld [vmem:[#allocation14 + $0xb8] sm:$0xff] }
 0x284   :  { %1778 = vmatpush.msrb.mxu3 %v1679_v16 }
 0x288   :  { %v955_v41 = vpop.f32.mrf.mxu3 }
 0x289   :  { %v2787_v34 = vadd.f32 %v955_v41, %v929_v26  ;;  %v1660_v26 = vld [vmem:[#allocation14 + $0x20] sm:$0xff]  ;;  %v2827_v41 = vld [vmem:[#allocation13] sm:$0x7] }
 0x28a   :  { %v975_v42 = vpop.f32.mrf.mxu1  ;;  %v2789_v43 = vpop.f32.mrf.mxu2  ;;  %1752 = vmatpush.msrb.mxu2 %v1660_v26  ;;  %v2830_v35 = vperm.slane %v2827_v41, 0  ;;  %v2841_v18 = vperm.slane %v2827_v41, 1 }
 0x28b   :  { %v2791_v44 = vadd.f32 %v1001_v47, %v975_v42  ;;  %v1004_v45 = vpop.f32.mrf.mxu0  ;;  %v1846_v47 = vld [vmem:[#allocation14 + $0x140] sm:$0xff]  ;;  %v1659_v42 = vld [vmem:[#allocation14 + $0x18] sm:$0xff] }
 0x28c   :  { %1932 = vmatpush.msrb.mxu0 %v1846_v47  ;;  %1753 = vmatpush.msrb.mxu2 %v1659_v42  ;;  %v1017_v9 = vadd.f32 %v2830_v35, %v2777_v30  ;;  %v1018_v27 = vadd.f32 %v2841_v18, %v2779_v33  ;;  %v2046_v33 = vld [vmem:[#allocation14 + $0x318] sm:$0xff] }
 0x290   :  { %v2793_v46 = vpop.f32.mrf.mxu3 }
 0x291   :  { %v1192_v0 = vadd.f32 %v2789_v43, %v2793_v46  ;;  %v1873_v43 = vld [vmem:[#allocation14 + $0x218] sm:$0xff] }
 0x292   :  { %v978_v48 = vpop.f32.mrf.mxu1  ;;  %v2797_v50 = vpop.f32.mrf.mxu2  ;;  %v2050_v46 = vld [vmem:[#allocation14 + $0x338] sm:$0xff] }
 0x293   :  { %v2795_v49 = vadd.f32 %v1004_v45, %v978_v48  ;;  %v1678_v45 = vld [vmem:[#allocation14 + $0xb0] sm:$0xff]  ;;  %v1845_v48 = vld [vmem:[#allocation14 + $0x138] sm:$0xff]  ;;  %v1304_v15 = vadd.f32 %v1192_v0, %v1017_v9  ;;  %v2044_v0 = vld [vmem:[#allocation14 + $0x308] sm:$0xff] }
 0x294   :  { %1779 = vmatpush.msrb.mxu3 %v1678_v45  ;;  %1933 = vmatpush.msrb.mxu0 %v1845_v48  ;;  %v1869_v45 = vld [vmem:[#allocation14 + $0x1f8] sm:$0xff] }
 0x295   :  { %v1007_v51 = vpop.f32.mrf.mxu0 }
 0x296   :  { %1934 = vmatpush.msrb.mxu0 %v1844_v58  ;;  %v1868_v58 = vld [vmem:[#allocation14 + $0x1f0] sm:$0xff] }
 0x298   :  { %v2799_v52 = vpop.f32.mrf.mxu3  ;;  %1935 = vmatpush.msrb.mxu0 %v1843_v63  ;;  %v1867_v63 = vld [vmem:[#allocation14 + $0x1e8] sm:$0xff] }
 0x299   :  { %v1195_v32 = vadd.f32 %v2797_v50, %v2799_v52 }
 0x29a   :  { %v981_v53 = vpop.f32.mrf.mxu1  ;;  %v2803_v57 = vpop.f32.mrf.mxu2  ;;  %1936 = vmatpush.msrb.mxu0 %v1842_v8  ;;  %v1690_v8 = vld [vmem:[#allocation14 + $0x110] sm:$0xff] }
 0x29b   :  { %v2801_v56 = vadd.f32 %v1007_v51, %v981_v53  ;;  %v1658_v51 = vld [vmem:[#allocation14 + $0x10] sm:$0xff]  ;;  %v1677_v53 = vld [vmem:[#allocation14 + $0xa8] sm:$0xff] }
 0x29c   :  { %1754 = vmatpush.msrb.mxu2 %v1658_v51  ;;  %1780 = vmatpush.msrb.mxu3 %v1677_v53 }
 0x29d   :  { %2094 = vmatpush.msra.mxu0 %v2050_v46  ;;  %v1021_v46 = vadd.f32 %v2841_v18, %v2783_v39  ;;  %v2042_v39 = vld [vmem:[#allocation14 + $0x2f8] sm:$0xff] }
 0x29e   :  { %1755 = vmatpush.msrb.mxu2 %v1657_v60  ;;  %1781 = vmatpush.msrb.mxu3 %v1676_v61  ;;  %v2045_v60 = vld [vmem:[#allocation14 + $0x310] sm:$0xff] }
 0x29f   :  { %v2807_v59 = vpop.f32.mrf.mxu0  ;;  %2095 = vmatpush.msra.mxu0 %v2049_v21 }
 0x2a0   :  { %v2805_v54 = vpop.f32.mrf.mxu3  ;;  %1756 = vmatpush.msrb.mxu2 %v1656_v3  ;;  %1782 = vmatpush.msrb.mxu3 %v1675_v4  ;;  %v1691_v4 = vld [vmem:[#allocation14 + $0x118] sm:$0xff] }
 0x2a1   :  { %2096 = vmatpush.msra.mxu0 %v2048_v25  ;;  %v1198_v9 = vadd.f32 %v2803_v57, %v2805_v54  ;;  %1811 = vmatpush.msrb.mxu1 %v1691_v4  ;;  %v1864_v25 = vld [vmem:[#allocation14 + $0x1d0] sm:$0xff] }
 0x2a2   :  { %v2809_v62 = vpop.f32.mrf.mxu1  ;;  %1783 = vmatpush.msrb.mxu3 %v1674_v11  ;;  %1950 = vmatpush.msra.mxu2 %v1873_v43  ;;  %v1866_v11 = vld [vmem:[#allocation14 + $0x1e0] sm:$0xff] }
 0x2a3   :  { %v1244_v22 = vadd.f32 %v2809_v62, %v2807_v59  ;;  %v1020_v62 = vadd.f32 %v2830_v35, %v2781_v7  ;;  %2097 = vmatpush.msra.mxu0 %v2047_v37  ;;  %1812 = vmatpush.msrb.mxu1 %v1690_v8 }
 0x2a4   :  { %1784 = vmatpush.msrb.mxu3 %v1673_v19  ;;  %1951 = vmatpush.msra.mxu2 %v1872_v20 }
 0x2a5   :  { %v2811_v12 = vpop.f32.mrf.mxu2  ;;  %v1305_v47 = vadd.f32 %v1244_v22, %v1018_v27  ;;  %v1307_v52 = vadd.f32 %v1195_v32, %v1020_v62  ;;  %2098 = vmatpush.msra.mxu0 %v2046_v33  ;;  %v1689_v33 = vld [vmem:[#allocation14 + $0x108] sm:$0xff] }
 0x2a6   :  { %1785 = vmatpush.msrb.mxu3 %v1672_v23  ;;  %1952 = vmatpush.msra.mxu2 %v1871_v24 }
 0x2a7   :  { %2099 = vmatpush.msra.mxu0 %v2045_v60  ;;  %1813 = vmatpush.msrb.mxu1 %v1689_v33 }
 0x2a8   :  { %v2813_v5 = vpop.f32.mrf.mxu3  ;;  %2234 = vmatpush.msra.mxu3 %v1873_v43  ;;  %1953 = vmatpush.msra.mxu2 %v1870_v36  ;;  %v2043_v43 = vld [vmem:[#allocation14 + $0x300] sm:$0xff] }
 0x2a9   :  { %v2815_v55 = vpop.f32.mrf.mxu0  ;;  %2100 = vmatpush.msra.mxu0 %v2044_v0 }
 0x2aa   :  { %v2817_v13 = vpop.f32.mrf.mxu1  ;;  %2235 = vmatpush.msra.mxu3 %v1872_v20  ;;  %1954 = vmatpush.msra.mxu2 %v1869_v45 }
 0x2ab   :  { %v1247_v3 = vadd.f32 %v2817_v13, %v2815_v55  ;;  %v1023_v55 = vadd.f32 %v2830_v35, %v2785_v40  ;;  %2101 = vmatpush.msra.mxu0 %v2043_v43  ;;  %v2033_v43 = vld [vmem:[#allocation14 + $0x2b0] sm:$0xff] }
 0x2ac   :  { %2236 = vmatpush.msra.mxu3 %v1871_v24  ;;  %1955 = vmatpush.msra.mxu2 %v1868_v58 }
 0x2ad   :  { %v1308_v19 = vadd.f32 %v1247_v3, %v1021_v46  ;;  %v1310_v22 = vadd.f32 %v1198_v9, %v1023_v55  ;;  %2102 = vmatpush.msra.mxu0 %v2042_v39  ;;  %v2037_v46 = vld [vmem:[#allocation14 + $0x2d0] sm:$0xff]  ;;  %v2036_v39 = vld [vmem:[#allocation14 + $0x2c8] sm:$0xff] }
 0x2ae   :  { %2237 = vmatpush.msra.mxu3 %v1870_v36  ;;  %1956 = vmatpush.msra.mxu2 %v1867_v63 }
 0x2af   :  { %v2819_v29 = vpop.f32.mrf.mxu2 }
 0x2b0   :  { %v2821_v31 = vpop.f32.mrf.mxu3  ;;  %2238 = vmatpush.msra.mxu3 %v1869_v45  ;;  %1957 = vmatpush.msra.mxu2 %v1866_v11 }
 0x2b2   :  { %2239 = vmatpush.msra.mxu3 %v1868_v58 }
 0x2b3   :  { %v2823_v38 = vpop.f32.mrf.mxu0  ;;  %v2825_v28 = vpop.f32.mrf.mxu1 }
 0x2b4   :  { %2240 = vmatpush.msra.mxu3 %v1867_v63  ;;  %v2038_v63 = vld [vmem:[#allocation14 + $0x2d8] sm:$0xff] }
 0x2b6   :  { %2241 = vmatpush.msra.mxu3 %v1866_v11 }
 0x2ba   :  { %v2834_v1 = vpop.f32.mrf.mxu2  ;;  %v2836_v2 = vpop.f32.mrf.mxu3 }
 0x2be   :  { %v1436_v6 = vpop.f32.mrf.mxu1  ;;  %v1462_v10 = vpop.f32.mrf.mxu0 }
 0x2bf   :  { %v1463_v17 = vadd.f32 %v1462_v10, %v1436_v6 }
 0x2c1   :  { %v1575_v30 = vadd.f32 %v1463_v17, %v1304_v15  ;;  %v1865_v17 = vld [vmem:[#allocation14 + $0x1d8] sm:$0xff] }
 0x2c2   :  { %1958 = vmatpush.msra.mxu2 %v1865_v17  ;;  %2242 = vmatpush.msra.mxu3 %v1865_v17  ;;  %v1859_v17 = vld [vmem:[#allocation14 + $0x1a8] sm:$0xff] }
 0x2c3   :  { %v1584_v14 = vmax.f32 %v1575_v30, 0.0 }
 0x2c4   :  { %1959 = vmatpush.msra.mxu2 %v1864_v25  ;;  %2243 = vmatpush.msra.mxu3 %v1864_v25 }
 0x2c5   :  { %v1602_v26 = vrot.slane %v1584_v14, 4  ;;  %v1488_v16 = vpop.f32.mrf.mxu3  ;;  %v1514_v59 = vpop.f32.mrf.mxu2  ;;  %v2041_v14 = vld [vmem:[#allocation14 + $0x2f0] sm:$0xff] }
 0x2c6   :  { %v1515_v42 = vadd.f32 %v1514_v59, %v1488_v16  ;;  %v2872_v16 = vperm.slane %v2827_v41, 2  ;;  %2103 = vmatpush.msra.mxu0 %v2041_v14  ;;  %v2040_v59 = vld [vmem:[#allocation14 + $0x2e8] sm:$0xff]  ;;  %v1250_v41 = vadd.f32 %v2825_v28, %v2823_v38  ;;  %v2888_v38 = vld [vmem:[#allocation14 + $0x1b8] sm:$0xff]  ;;  %v2031_v14 = vld [vmem:[#allocation14 + $0x2a0] sm:$0xff] }
 0x2c7   :  { %1629 = vst [vmem:[#allocation2] sm:$0xf0] %v1602_v26  ;;  %v1439_v48 = vpop.f32.mrf.mxu1  ;;  %v1465_v50 = vpop.f32.mrf.mxu0  ;;  %v2034_v28 = vld [vmem:[#allocation14 + $0x2b8] sm:$0xff] }
 0x2c8   :  { %v1576_v51 = vadd.f32 %v1515_v42, %v1305_v47  ;;  %v1466_v53 = vadd.f32 %v1465_v50, %v1439_v48  ;;  %v1862_v48 = vld [vmem:[#allocation14 + $0x1c0] sm:$0xff]  ;;  %2104 = vmatpush.msra.mxu0 %v2040_v59  ;;  %v1019_v0 = vadd.f32 %v2872_v16, %v2791_v44  ;;  %v2900_v44 = vld [vmem:[#allocation14 + $0x1b0] sm:$0xff] }
 0x2c9   :  { %v1688_v50 = vld [vmem:[#allocation14 + $0x100] sm:$0xff] }
 0x2ca   :  { %v1585_v61 = vmax.f32 %v1576_v51, 0.0  ;;  %v1578_v7 = vadd.f32 %v1466_v53, %v1307_v52  ;;  %v2039_v52 = vld [vmem:[#allocation14 + $0x2e0] sm:$0xff]  ;;  %v1296_v51 = vadd.f32 %v2813_v5, %v2811_v12  ;;  %1814 = vmatpush.msrb.mxu1 %v1688_v50 }
 0x2cb   :  { %2105 = vmatpush.msra.mxu0 %v2039_v52 }
 0x2cc   :  { %v2855_v6 = vrot.slane %v1585_v61, 4  ;;  %v1587_v10 = vmax.f32 %v1578_v7, 0.0  ;;  %v1024_v61 = vadd.f32 %v2841_v18, %v2787_v34  ;;  %v1306_v9 = vadd.f32 %v1296_v51, %v1019_v0  ;;  %2065 = vmatpush.msra.mxu1 %v2034_v28 }
 0x2cd   :  { %2106 = vmatpush.msra.mxu0 %v2038_v63  ;;  %v2054_v63 = vld [vmem:[#allocation14 + $0x358] sm:$0xff]  ;;  %v1025_v0 = vadd.f32 %v2872_v16, %v2801_v56 }
 0x2ce   :  { %1630 = vst [vmem:[#allocation2 + $0x8] sm:$0xf0] %v2855_v6  ;;  %v2862_v13 = vrot.slane %v1587_v10, 4  ;;  %v1491_v57 = vpop.f32.mrf.mxu3  ;;  %v1517_v54 = vpop.f32.mrf.mxu2  ;;  %v1644_v15 = vld [vmem:[#allocation2] sm:$0xf0]  ;;  %v1311_v34 = vadd.f32 %v1250_v41, %v1024_v61  ;;  %2066 = vmatpush.msra.mxu1 %v2033_v43  ;;  %v1302_v61 = vadd.f32 %v2836_v2, %v2834_v1  ;;  %v2053_v1 = vld [vmem:[#allocation14 + $0x350] sm:$0xff] }
 0x2cf   :  { %v1518_v20 = vadd.f32 %v1517_v54, %v1491_v57  ;;  %v1704_v21 = vrot.slane %v1644_v15, 4  ;;  %v1835_v30 = vld [vmem:[#allocation2] sm:$0xfc]  ;;  %2107 = vmatpush.msra.mxu0 %v2037_v46  ;;  %v2025_v46 = vld [vmem:[#allocation14 + $0x270] sm:$0xff] }
 0x2d0   :  { %v2866_v40 = vsel %vm420_vm6, %v1602_v26, %v2862_v13  ;;  %v1442_v35 = vpop.f32.mrf.mxu1  ;;  %v1468_v23 = vpop.f32.mrf.mxu0  ;;  %v1884_v24 = vrot.slane %v1835_v30, 2  ;;  %v1863_v26 = vld [vmem:[#allocation14 + $0x1c8] sm:$0xff] }
 0x2d1   :  { %1633 = vst [vmem:[#allocation2 + $0x18] sm:$0xff] %v2866_v40  ;;  %v1579_v27 = vadd.f32 %v1518_v20, %v1308_v19  ;;  %v1469_v32 = vadd.f32 %v1468_v23, %v1442_v35  ;;  %v1705_v36 = vrot.slane %v2866_v40, 4  ;;  %v1885_v37 = vrot.slane %v2866_v40, 2  ;;  %1960 = vmatpush.msra.mxu2 %v1863_v26  ;;  %2244 = vmatpush.msra.mxu3 %v1863_v26  ;;  %v2032_v30 = vld [vmem:[#allocation14 + $0x2a8] sm:$0xff]  ;;  %v1858_v35 = vld [vmem:[#allocation14 + $0x1a0] sm:$0xff] }
 0x2d2   :  { %v1299_v23 = vadd.f32 %v2821_v31, %v2819_v29  ;;  %2067 = vmatpush.msra.mxu1 %v2032_v30  ;;  %2108 = vmatpush.msra.mxu0 %v2036_v39  ;;  %v2052_v2 = vld [vmem:[#allocation14 + $0x348] sm:$0xff]  ;;  %v2022_v39 = vld [vmem:[#allocation14 + $0x258] sm:$0xff] }
 0x2d3   :  { %v1588_v62 = vmax.f32 %v1579_v27, 0.0  ;;  %v1581_v47 = vadd.f32 %v1469_v32, %v1310_v22  ;;  %v1706_v42 = vsel %vm420_vm6, %v1704_v21, %v1705_v36  ;;  %v1886_v45 = vsel %vm525_vm8, %v1884_v24, %v1885_v37  ;;  %1961 = vmatpush.msra.mxu2 %v1862_v48  ;;  %2245 = vmatpush.msra.mxu3 %v1862_v48  ;;  %v2035_v27 = vld [vmem:[#allocation14 + $0x2c0] sm:$0xff] }
 0x2d4   :  { %1757 = vmatmul.f32.vlgmr.msrb.gmra.mxu2 %v1706_v42  ;;  %1937 = vmatmul.f32.vlgmr.msrb.gmra.mxu0 %v1886_v45 }
 0x2d5   :  { %v2884_v53 = vrot.slane %v1588_v62, 4  ;;  %v1590_v58 = vmax.f32 %v1581_v47, 0.0  ;;  %v1645_v60 = vld [vmem:[#allocation2 + $0x8] sm:$0xf0]  ;;  %1962 = vmatpush.msra.mxu2 %v2888_v38  ;;  %2246 = vmatpush.msra.mxu3 %v2888_v38  ;;  %v1877_v38 = vld [vmem:[#allocation14 + $0x238] sm:$0xff] }
 0x2d6   :  { %v1707_v7 = vrot.slane %v1645_v60, 4  ;;  %2068 = vmatpush.msra.mxu1 %v2031_v14  ;;  %2109 = vmatpush.msra.mxu0 %v2035_v27  ;;  %v2021_v27 = vld [vmem:[#allocation14 + $0x250] sm:$0xff] }
 0x2d7   :  { %v2895_v12 = vsel %vm420_vm6, %v2855_v6, %v2884_v53  ;;  %v1611_v5 = vrot.slane %v1590_v58, 4  ;;  %v1494_v3 = vpop.f32.mrf.mxu3  ;;  %v1520_v4 = vpop.f32.mrf.mxu2  ;;  %1963 = vmatpush.msra.mxu2 %v2900_v44  ;;  %2247 = vmatpush.msra.mxu3 %v2900_v44 }
 0x2d8   :  { %1634 = vst [vmem:[#allocation2 + $0x20] sm:$0xff] %v2895_v12  ;;  %v1521_v18 = vadd.f32 %v1520_v4, %v1494_v3  ;;  %v1708_v8 = vrot.slane %v2895_v12, 4  ;;  %v1888_v32 = vrot.slane %v2895_v12, 2  ;;  %v2027_v3 = vld [vmem:[#allocation14 + $0x280] sm:$0xff]  ;;  %v1876_v4 = vld [vmem:[#allocation14 + $0x230] sm:$0xff] }
 0x2d9   :  { %v2904_v6 = vsel %vm420_vm6, %v2862_v13, %v1611_v5  ;;  %1639 = vst [vmem:[#allocation2 + $0x48] sm:$0xf] %v1611_v5  ;;  %v1540_v10 = vpop.f32.mrf.mxu0  ;;  %v1566_v11 = vpop.f32.mrf.mxu1  ;;  %1964 = vmatpush.msra.mxu2 %v1859_v17  ;;  %2248 = vmatpush.msra.mxu3 %v1859_v17  ;;  %v1874_v17 = vld [vmem:[#allocation14 + $0x220] sm:$0xff] }
 0x2da   :  { %1636 = vst [vmem:[#allocation2 + $0x30] sm:$0xff] %v2904_v6  ;;  %v1582_v55 = vadd.f32 %v1521_v18, %v1311_v34  ;;  %v1567_v57 = vadd.f32 %v1566_v11, %v1540_v10  ;;  %v1709_v54 = vsel %vm420_vm6, %v1707_v7, %v1708_v8  ;;  %v1713_v15 = vrot.slane %v2904_v6, 4  ;;  %v2028_v7 = vld [vmem:[#allocation14 + $0x288] sm:$0xff]  ;;  %v2026_v10 = vld [vmem:[#allocation14 + $0x278] sm:$0xff] }
 0x2db   :  { %1786 = vmatmul.f32.vlgmr.msrb.gmra.mxu3 %v1709_v54  ;;  %v1893_v13 = vrot.slane %v2904_v6, 2  ;;  %1965 = vmatpush.msra.mxu2 %v1858_v35  ;;  %v1836_v54 = vld [vmem:[#allocation2 + $0x8] sm:$0xfc] }
 0x2dc   :  { %v1591_v19 = vmax.f32 %v1582_v55, 0.0  ;;  %v1577_v20 = vadd.f32 %v1567_v57, %v1306_v9  ;;  %v1714_v21 = vsel %vm420_vm6, %v1705_v36, %v1713_v15  ;;  %v2030_v36 = vld [vmem:[#allocation14 + $0x298] sm:$0xff]  ;;  %2249 = vmatpush.msra.mxu3 %v1858_v35  ;;  %v2051_v57 = vld [vmem:[#allocation14 + $0x340] sm:$0xff]  ;;  %v1887_v30 = vrot.slane %v1836_v54, 2 }
 0x2dd   :  { %1760 = vmatmul.f32.gmra.mxu2 %v1714_v21  ;;  %v1894_v22 = vsel %vm525_vm8, %v1885_v37, %v1893_v13  ;;  %v1022_v37 = vadd.f32 %v2872_v16, %v2795_v49  ;;  %2069 = vmatpush.msra.mxu1 %v2030_v36  ;;  %v1875_v16 = vld [vmem:[#allocation14 + $0x228] sm:$0xff] }
 0x2de   :  { %v1613_v24 = vrot.slane %v1591_v19, 4  ;;  %v1586_v25 = vmax.f32 %v1577_v20, 0.0  ;;  %1940 = vmatmul.f32.gmra.mxu0 %v1894_v22  ;;  %2135 = vmatpush.msrb.mxu2 %v2054_v63  ;;  %v2023_v19 = vld [vmem:[#allocation14 + $0x260] sm:$0xff] }
 0x2df   :  { %v1309_v48 = vadd.f32 %v1299_v23, %v1022_v37  ;;  %1991 = vmatpush.msrb.mxu3 %v1877_v38  ;;  %v2013_v37 = vld [vmem:[#allocation2 + $0x8] sm:$0xff] }
 0x2e0   :  { %v2926_v26 = vsel %vm420_vm6, %v2884_v53, %v1613_v24  ;;  %1640 = vst [vmem:[#allocation2 + $0x50] sm:$0xf] %v1613_v24  ;;  %v1604_v29 = vrot.slane %v1586_v25, 4  ;;  %v2928_v31 = vld [vmem:[#allocation2 + $0x48] sm:$0xff]  ;;  %2136 = vmatpush.msrb.mxu2 %v2053_v1  ;;  %v1889_v25 = vsel %vm525_vm8, %v1887_v30, %v1888_v32 }
 0x2e1   :  { %v2930_v59 = vld [vmem:[#allocation2 + $0x48] sm:$0x3f]  ;;  %1637 = vst [vmem:[#allocation2 + $0x38] sm:$0xff] %v2926_v26  ;;  %v1543_v62 = vpop.f32.mrf.mxu0  ;;  %v1569_v47 = vpop.f32.mrf.mxu1  ;;  %v1715_v42 = vrot.slane %v2926_v26, 4  ;;  %v1719_v49 = vrot.slane %v2928_v31, 4  ;;  %v1895_v33 = vrot.slane %v2926_v26, 2  ;;  %1992 = vmatpush.msrb.mxu3 %v1876_v4 }
 0x2e2   :  { %v1899_v45 = vrot.slane %v2930_v59, 2  ;;  %1632 = vst.msk [vmem:[#allocation2 + $0x10] sm:$0xf0] %vm1631_vm11, %v1604_v29  ;;  %v1570_v41 = vadd.f32 %v1569_v47, %v1543_v62  ;;  %v2029_v53 = vld [vmem:[#allocation14 + $0x290] sm:$0xff]  ;;  %2137 = vmatpush.msrb.mxu2 %v2052_v2  ;;  %v2019_v59 = vld [vmem:[#allocation14 + $0x240] sm:$0xff] }
 0x2e3   :  { %v1716_v50 = vsel %vm420_vm6, %v1708_v8, %v1715_v42  ;;  %v1720_v52 = vsel %vm420_vm6, %v1713_v15, %v1719_v49  ;;  %v2950_v58 = vsel %vm525_vm8, %v1888_v32, %v1895_v33  ;;  %2070 = vmatpush.msra.mxu1 %v2029_v53  ;;  %v1312_v8 = vadd.f32 %v1302_v61, %v1025_v0  ;;  %v2024_v15 = vld [vmem:[#allocation14 + $0x268] sm:$0xff] }
 0x2e4   :  { %v1900_v51 = vsel %vm525_vm8, %v1893_v13, %v1899_v45  ;;  %v1580_v60 = vadd.f32 %v1570_v41, %v1309_v48  ;;  %1789 = vmatmul.f32.gmra.mxu3 %v1716_v50  ;;  %2138 = vmatpush.msrb.mxu2 %v2051_v57 }
 0x2e5   :  { %1763 = vmatmul.f32.gmra.mxu2 %v1720_v52  ;;  %2071 = vmatpush.msra.mxu1 %v2028_v7 }
 0x2e6   :  { %v1589_v28 = vmax.f32 %v1580_v60, 0.0  ;;  %1943 = vmatmul.f32.gmra.mxu0 %v1900_v51  ;;  %1993 = vmatpush.msrb.mxu3 %v1875_v16 }
 0x2e7   :  { %v1654_v5 = vld [vmem:[#allocation2 + $0x50] sm:$0xff]  ;;  %2072 = vmatpush.msra.mxu1 %v2027_v3 }
 0x2e8   :  { %v1609_v34 = vrot.slane %v1589_v28, 4  ;;  %v1721_v18 = vrot.slane %v1654_v5, 4  ;;  %1994 = vmatpush.msrb.mxu3 %v1874_v17  ;;  %v1839_v14 = vld [vmem:[#allocation2 + $0x50] sm:$0x3f]  ;;  %v2015_v28 = vld [vmem:[#allocation2 + $0x48] sm:$0xf] }
 0x2e9   :  { %v1546_v44 = vpop.f32.mrf.mxu0  ;;  %v1572_v9 = vpop.f32.mrf.mxu1  ;;  %2073 = vmatpush.msra.mxu1 %v2026_v10  ;;  %v1646_v21 = vld [vmem:[#allocation2 + $0x10] sm:$0xf0]  ;;  %v1901_v31 = vrot.slane %v1839_v14, 2  ;;  %v2016_v53 = vld [vmem:[#allocation2 + $0x50] sm:$0xf] }
 0x2ea   :  { %v1610_v11 = vsel %vm420_vm6, %v1604_v29, %v1609_v34  ;;  %v1573_v43 = vadd.f32 %v1572_v9, %v1546_v44  ;;  %v1722_v56 = vsel %vm420_vm6, %v1715_v42, %v1721_v18  ;;  %v1710_v23 = vrot.slane %v1646_v21, 4  ;;  %v2020_v29 = vld [vmem:[#allocation14 + $0x248] sm:$0xff]  ;;  %v2014_v48 = vld [vmem:[#allocation2 + $0x10] sm:$0xff]  ;;  %v2270_v17 = vld [vmem:[%s3016_s8] ss:$0 sm:$0xff] }
 0x2eb   :  { %1635 = vst.msk [vmem:[#allocation2 + $0x28] sm:$0xff] %vm151_vm0, %v1610_v11  ;;  %2074 = vmatpush.msra.mxu1 %v2025_v46  ;;  %v1902_v32 = vsel %vm525_vm8, %v1895_v33, %v1901_v31  ;;  %v1837_v33 = vld [vmem:[#allocation2 + $0x10] sm:$0xfc] }
 0x2ec   :  { %v1583_v55 = vadd.f32 %v1573_v43, %v1312_v8  ;;  %1792 = vmatmul.f32.gmra.mxu3 %v1722_v56  ;;  %v1890_v52 = vrot.slane %v1837_v33, 2 }
 0x2ed   :  { %1766 = vmatmul.f32.gmra.mxu2 %v1719_v49  ;;  %2075 = vmatpush.msra.mxu1 %v2024_v15 }
 0x2ee   :  { %v1592_v13 = vmax.f32 %v1583_v55, 0.0  ;;  %1946 = vmatmul.f32.gmra.mxu0 %v1899_v45 }
 0x2ef   :  { %2076 = vmatpush.msra.mxu1 %v2023_v19 }
 0x2f0   :  { %v1615_v20 = vrot.slane %v1592_v13, 4 }
 0x2f1   :  { %2077 = vmatpush.msra.mxu1 %v2022_v39 }
 0x2f2   :  { %v1616_v22 = vsel %vm420_vm6, %v1609_v34, %v1615_v20  ;;  %1642 = vst.msk [vmem:[#allocation2 + $0x58] sm:$0xf] %vm1641_vm12, %v1615_v20  ;;  %v1649_v35 = vld [vmem:[#allocation2 + $0x28] sm:$0xff] }
 0x2f3   :  { %1638 = vst.msk [vmem:[#allocation2 + $0x40] sm:$0xff] %vm151_vm0, %v1616_v22  ;;  %v1711_v24 = vrot.slane %v1649_v35, 4  ;;  %2078 = vmatpush.msra.mxu1 %v2021_v27  ;;  %v1891_v50 = vrot.slane %v1649_v35, 2 }
 0x2f4   :  { %1795 = vmatmul.f32.gmra.mxu3 %v1721_v18 }
 0x2f5   :  { %v1712_v36 = vsel %vm420_vm6, %v1710_v23, %v1711_v24  ;;  %1966 = vmatmul.f32.vlgmr.msra.gmra.mxu2 %v1889_v25  ;;  %2079 = vmatpush.msra.mxu1 %v2020_v29  ;;  %v1892_v51 = vsel %vm525_vm8, %v1890_v52, %v1891_v50 }
 0x2f6   :  { %2222 = vmatmul.msk.f32.vlgmr.msrb.gmra.mxu1 %vm151_vm0, %v1712_v36  ;;  %2110 = vmatmul.f32.vlgmr.msra.gmra.mxu0 %v2013_v37 }
 0x2f7   :  { %2080 = vmatpush.msra.mxu1 %v2019_v59 }
 0x2f9   :  { %v1655_v49 = vld [vmem:[#allocation2 + $0x58] sm:$0xff] }
 0x2fa   :  { %v1652_v62 = vld [vmem:[#allocation2 + $0x40] sm:$0xff]  ;;  %v1723_v45 = vrot.slane %v1655_v49, 4  ;;  %v1840_v60 = vld [vmem:[#allocation2 + $0x58] sm:$0x3f] }
 0x2fb   :  { %v1717_v47 = vrot.slane %v1652_v62, 4  ;;  %v1903_v61 = vrot.slane %v1840_v60, 2  ;;  %v2017_v38 = vld [vmem:[#allocation2 + $0x58] sm:$0xf] }
 0x2fc   :  { %1972 = vmatmul.f32.vlgmr.msra.gmra.mxu3 %v1902_v32 }
 0x2fd   :  { %v1718_v42 = vsel %vm420_vm6, %v1711_v24, %v1717_v47  ;;  %1969 = vmatmul.f32.gmra.mxu2 %v2950_v58  ;;  %v1724_v41 = vsel %vm420_vm6, %v1717_v47, %v1723_v45 }
 0x2fe   :  { %2223 = vmatmul.msk.f32.gmra.mxu1 %vm151_vm0, %v1718_v42  ;;  %2113 = vmatmul.f32.gmra.mxu0 %v2895_v12  ;;  %v1897_v12 = vrot.slane %v1652_v62, 2 }
 0x300   :  { %v1898_v58 = vsel %vm525_vm8, %v1891_v50, %v1897_v12  ;;  %v1904_v7 = vsel %vm525_vm8, %v1897_v12, %v1903_v61 }
 0x304   :  { %1975 = vmatmul.f32.gmra.mxu3 %v1901_v31 }
 0x305   :  { %2230 = vmatmul.msk.f32.vlgmr.msrb.gmra.mxu2 %vm151_vm0, %v2014_v48 }
 0x306   :  { %2224 = vmatmul.msk.f32.gmra.mxu1 %vm151_vm0, %v1724_v41  ;;  %2116 = vmatmul.f32.gmra.mxu0 %v2926_v26  ;;  %v2012_v26 = vld [vmem:[#allocation2] sm:$0xff] }
 0x30c   :  { %2226 = vmatmul.msk.f32.vlgmr.msrb.gmra.mxu3 %vm151_vm0, %v1892_v51 }
 0x30d   :  { %2231 = vmatmul.msk.f32.gmra.mxu2 %vm151_vm0, %v1649_v35 }
 0x30e   :  { %2225 = vmatmul.msk.f32.gmra.mxu1 %vm151_vm0, %v1723_v45  ;;  %2119 = vmatmul.f32.gmra.mxu0 %v2016_v53 }
 0x314   :  { %2227 = vmatmul.msk.f32.gmra.mxu3 %vm151_vm0, %v1898_v58 }
 0x315   :  { %2232 = vmatmul.msk.f32.gmra.mxu2 %vm151_vm0, %v1652_v62 }
 0x316   :  { %2081 = vmatmul.f32.vlgmr.msra.gmra.mxu1 %v2012_v26 }
 0x31c   :  { %2228 = vmatmul.msk.f32.gmra.mxu3 %vm151_vm0, %v1904_v7 }
 0x31d   :  { %2233 = vmatmul.msk.f32.gmra.mxu2 %vm151_vm0, %v2017_v38 }
 0x31e   :  { %2084 = vmatmul.f32.gmra.mxu1 %v2866_v40 }
 0x324   :  { %2229 = vmatmul.msk.f32.gmra.mxu3 %vm151_vm0, %v1903_v61 }
 0x326   :  { %2087 = vmatmul.f32.gmra.mxu1 %v2904_v6 }
 0x32e   :  { %2090 = vmatmul.f32.gmra.mxu1 %v2015_v28 }
 0x351   :  { %v1938_v3 = vpop.f32.mrf.mxu0 }
 0x357   :  { %v1758_v63 = vpop.f32.mrf.mxu2 }
 0x35b   :  { %v1941_v18 = vpop.f32.mrf.mxu0 }
 0x35e   :  { %v1787_v0 = vpop.f32.mrf.mxu3 }
 0x35f   :  { %v1788_v57 = vadd.f32 %v1787_v0, %v1758_v63 }
 0x360   :  { %v1761_v5 = vpop.f32.mrf.mxu2 }
 0x363   :  { %v1944_v9 = vpop.f32.mrf.mxu0 }
 0x367   :  { %v1790_v4 = vpop.f32.mrf.mxu3 }
 0x368   :  { %v1764_v34 = vpop.f32.mrf.mxu2  ;;  %v1791_v22 = vadd.f32 %v1790_v4, %v1761_v5 }
 0x36b   :  { %v1947_v43 = vpop.f32.mrf.mxu0 }
 0x36f   :  { %v1793_v1 = vpop.f32.mrf.mxu3 }
 0x370   :  { %v1767_v2 = vpop.f32.mrf.mxu2  ;;  %v1794_v47 = vadd.f32 %v1793_v1, %v1764_v34 }
 0x373   :  { %v1816_v8 = vpop.f32.mrf.mxu1  ;;  %v2111_v55 = vpop.f32.mrf.mxu0 }
 0x374   :  { %v1817_v13 = vadd.f32 %v1816_v8, %v1788_v57 }
 0x376   :  { %v1831_v30 = vadd.f32 %v2270_v17, %v1817_v13 }
 0x377   :  { %v1796_v44 = vpop.f32.mrf.mxu3 }
 0x378   :  { %v1967_v40 = vpop.f32.mrf.mxu2  ;;  %v1797_v58 = vadd.f32 %v1796_v44, %v1767_v2 }
 0x379   :  { %v1968_v19 = vadd.f32 %v1967_v40, %v1938_v3 }
 0x37b   :  { %v1819_v10 = vpop.f32.mrf.mxu1  ;;  %v2114_v24 = vpop.f32.mrf.mxu0 }
 0x37c   :  { %v1820_v14 = vadd.f32 %v1819_v10, %v1791_v22 }
 0x37e   :  { %v1832_v59 = vadd.f32 %v2270_v17, %v1820_v14 }
 0x37f   :  { %v1973_v11 = vpop.f32.mrf.mxu3 }
 0x380   :  { %v1970_v6 = vpop.f32.mrf.mxu2  ;;  %v1974_v48 = vadd.f32 %v1973_v11, %v1944_v9 }
 0x381   :  { %v1971_v27 = vadd.f32 %v1970_v6, %v1941_v18 }
 0x383   :  { %v1822_v56 = vpop.f32.mrf.mxu1  ;;  %v2117_v33 = vpop.f32.mrf.mxu0 }
 0x384   :  { %v1823_v45 = vadd.f32 %v1822_v56, %v1794_v47 }
 0x386   :  { %v1833_v53 = vadd.f32 %v2270_v17, %v1823_v45 }
 0x387   :  { %v1976_v16 = vpop.f32.mrf.mxu3 }
 0x388   :  { %v2140_v54 = vpop.f32.mrf.mxu2  ;;  %v1977_v38 = vadd.f32 %v1976_v16, %v1947_v43 }
 0x38b   :  { %v1825_v46 = vpop.f32.mrf.mxu1  ;;  %v2120_v0 = vpop.f32.mrf.mxu0 }
 0x38c   :  { %v1826_v7 = vadd.f32 %v1825_v46, %v1797_v58 }
 0x38e   :  { %v1834_v3 = vadd.f32 %v2270_v17, %v1826_v7 }
 0x38f   :  { %v1996_v15 = vpop.f32.mrf.mxu3 }
 0x390   :  { %v1997_v20 = vadd.f32 %v1996_v15, %v1968_v19  ;;  %v2143_v37 = vpop.f32.mrf.mxu2 }
 0x392   :  { %v2008_v23 = vadd.f32 %v1997_v20, %v1831_v30 }
 0x393   :  { %v2082_v21 = vpop.f32.mrf.mxu1 }
 0x394   :  { %v2112_v39 = vadd.f32 %v2111_v55, %v2082_v21 }
 0x396   :  { %v2141_v35 = vadd.f32 %v2140_v54, %v2112_v39 }
 0x397   :  { %v1999_v25 = vpop.f32.mrf.mxu3 }
 0x398   :  { %v2152_v36 = vadd.f32 %v2141_v35, %v2008_v23  ;;  %v2000_v29 = vadd.f32 %v1999_v25, %v1971_v27  ;;  %v2146_v52 = vpop.f32.mrf.mxu2 }
 0x39a   :  { %2157 = vst.msk [vmem:[%s3017_s9] sm:$0xff] %vm2156_vm13, %v2152_v36  ;;  %v2009_v42 = vadd.f32 %v2000_v29, %v1832_v59 }
 0x39b   :  { %v2085_v31 = vpop.f32.mrf.mxu1 }
 0x39c   :  { %v2115_v62 = vadd.f32 %v2114_v24, %v2085_v31 }
 0x39e   :  { %v2144_v32 = vadd.f32 %v2143_v37, %v2115_v62 }
 0x39f   :  { %v2002_v49 = vpop.f32.mrf.mxu3 }
 0x3a0   :  { %v2153_v41 = vadd.f32 %v2144_v32, %v2009_v42  ;;  %v2003_v50 = vadd.f32 %v2002_v49, %v1974_v48  ;;  %v2149_v34 = vpop.f32.mrf.mxu2 }
 0x3a2   :  { %2158 = vst.msk [vmem:[%s3017_s9 + $0x8] sm:$0xff] %vm2156_vm13, %v2153_v41  ;;  %v2010_v26 = vadd.f32 %v2003_v50, %v1833_v53 }
 0x3a3   :  { %v2088_v51 = vpop.f32.mrf.mxu1 }
 0x3a4   :  { %v2118_v12 = vadd.f32 %v2117_v33, %v2088_v51 }
 0x3a6   :  { %v2147_v60 = vadd.f32 %v2146_v52, %v2118_v12 }
 0x3a7   :  { %v2005_v61 = vpop.f32.mrf.mxu3 }
 0x3a8   :  { %v2154_v28 = vadd.f32 %v2147_v60, %v2010_v26  ;;  %v2006_v63 = vadd.f32 %v2005_v61, %v1977_v38 }
 0x3aa   :  { %2159 = vst.msk [vmem:[%s3017_s9 + $0x10] sm:$0xff] %vm2156_vm13, %v2154_v28  ;;  %v2011_v1 = vadd.f32 %v2006_v63, %v1834_v3 }
 0x3ab   :  { %v2091_v5 = vpop.f32.mrf.mxu1 }
 0x3ac   :  { %v2121_v4 = vadd.f32 %v2120_v0, %v2091_v5 }
 0x3ae   :  { %v2150_v18 = vadd.f32 %v2149_v34, %v2121_v4 }
 0x3b0   :  { %v2155_v2 = vadd.f32 %v2150_v18, %v2011_v1 }
 0x3b2   :  { %2161 = vst.msk [vmem:[%s3017_s9 + $0x18] sm:$0xf] %vm2160_vm14, %v2155_v2 }
 0x3b3   :  { %2166 = vsyncpa [#allocation4], 1 }
 0x3b4   :  { %2167 = vsyncpa [#allocation6], 1 }
 0x3b5   :  { %2168 = vsyncpa [#allocation9], 1 }
 0x3b6   :  { %2169 = vsyncpa [#allocation12], 1 }
 0x3b7   :  { %2170 = vsyncpa [#allocation15], 1 }

</bundles_post_ra>
